<compile_context>
chip_gen: v6e
topology: v6e:2x2x1
jax: 0.10.0
libtpu: 0.0.40
codegen_flags: <defaults>
</compile_context>

<pallas_src>
import math
import functools

import jax
import jax.numpy as jnp
from jax.experimental import pallas as pl
from jax.experimental.pallas import tpu as pltpu


def _round_up(x, m):
    return ((x + m - 1) // m) * m


def _pad2d(x, rows, cols):
    out = jnp.zeros((rows, cols), x.dtype)
    return out.at[:x.shape[0], :x.shape[1]].set(x)


def _pad_gates(m, h, h_pad):
    """(rows, 3h) -> (rows, 3*h_pad): each GRU gate block zero-padded to h_pad."""
    return jnp.concatenate(
        [_pad2d(m[:, g * h:(g + 1) * h], m.shape[0], h_pad) for g in range(3)],
        axis=1)


def _vmem_capacity_bytes():
    """Per-core VMEM capacity; conservative (v7x-sized) fallback if unavailable."""
    try:
        return int(pltpu.get_tpu_info().vmem_capacity_bytes)
    except Exception:
        return 64 * 2 ** 20


# ------------------------------- Pallas kernel -------------------------------
def _srgnn_kernel(a_ref, at_ref, feat_mm_ref, h_ref,
                  w12f_ref, whh_ref, bih_ref, bhh_ref,
                  out_ref, s_acc, *, d_pad, deg_col):
    """Grid = (dst-row tiles, src/K tiles).

    a_ref    : (TM, TK)           tile of A  (A[dst, src])
    at_ref   : (TM, TK)           tile of A^T (reversed graph)
    feat_mm  : (TK, d_pad)        [feat | 1 | 0-pad]; column `deg_col` is ones,
                                  so A @ feat_mm also yields the weighted degree.
    h_ref    : (TM, d_pad)        f32 destination features = GRU hidden state.
    w12f     : (2*d_pad, 3*h_pad) stacked [W1^T Wih_1 ; W2^T Wih_2] (per-gate pad).
    whh      : (h_pad, 3*h_pad)   W_hh^T (per-gate padded).
    bih/bhh  : (1, 3*h_pad)
    out_ref  : (TM, h_pad)
    s_acc    : (TM, 2*d_pad) f32  message/degree accumulator over the K axis.
    """
    k = pl.program_id(1)

    @pl.when(k == 0)
    def _():
        s_acc[...] = jnp.zeros_like(s_acc)

    # Weighted message sum + degree in one MXU matmul per direction
    # (fused ones column), f32 accumulation regardless of matmul_dtype.
    feat_mm = feat_mm_ref[...]
    s_acc[:, :d_pad] = s_acc[:, :d_pad] + jnp.dot(
        a_ref[...], feat_mm, preferred_element_type=jnp.float32)
    s_acc[:, d_pad:] = s_acc[:, d_pad:] + jnp.dot(
        at_ref[...], feat_mm, preferred_element_type=jnp.float32)

    @pl.when(k == pl.num_programs(1) - 1)
    def _():
        s1 = s_acc[:, :d_pad]
        s2 = s_acc[:, d_pad:]
        deg1 = s1[:, deg_col:deg_col + 1]            # (TM, 1) f32 degree
        deg2 = s2[:, deg_col:deg_col + 1]
        # Exact division for the degree (tiny, off the critical path).
        inv1 = jnp.where(deg1 > 0.0, 1.0 / jnp.where(deg1 > 0.0, deg1, 1.0), 0.0)
        inv2 = jnp.where(deg2 > 0.0, 1.0 / jnp.where(deg2 > 0.0, deg2, 1.0), 0.0)
        # Weighted means; the degree / padding columns never leak into gi
        # because the corresponding rows of w12f are zero.
        s_acc[:, :d_pad] = s1 * inv1
        s_acc[:, d_pad:] = s2 * inv2

        # gi = cat(W1 n1, W2 n2) @ W_ih^T + b_ih, with W1/W2 pre-folded and both
        # halves contracted in ONE K = 2*d_pad (=256) MXU matmul.
        gi = jnp.dot(s_acc[...], w12f_ref[...],
                     preferred_element_type=jnp.float32) + bih_ref[...]

        h = h_ref[...].astype(jnp.float32)
        gh = jnp.dot(h, whh_ref[...],
                     preferred_element_type=jnp.float32) + bhh_ref[...]

        hp = out_ref.shape[1]      # per-gate padding => 128-lane aligned slices
        r = jax.nn.sigmoid(gi[:, 0 * hp:1 * hp] + gh[:, 0 * hp:1 * hp])
        z = jax.nn.sigmoid(gi[:, 1 * hp:2 * hp] + gh[:, 1 * hp:2 * hp])
        n = jnp.tanh(gi[:, 2 * hp:3 * hp] + r * gh[:, 2 * hp:3 * hp])
        out_ref[...] = ((1.0 - z) * n + z * h).astype(out_ref.dtype)


# -------------------------- parameter fusion / padding -----------------------
def _pack_params(params, d_in, h_out, d_pad, h_pad):
    f32 = jnp.float32
    w1_t = params["W1"].astype(f32).T                     # (D, H)
    w2_t = params["W2"].astype(f32).T                     # (D, H)
    wih_t = params["W_ih"].astype(f32).T                  # (2H, 3H)  (D == H)
    whh_t = params["W_hh"].astype(f32).T                  # (H, 3H)
    # Fold W1/W2 into the GRU input weights:
    #   cat(n1, n2) @ W_ih^T == n1 @ (W1^T Wih_1) + n2 @ (W2^T Wih_2)
    w1_fused = w1_t @ wih_t[:h_out]                       # (D, 3H)
    w2_fused = w2_t @ wih_t[h_out:2 * h_out]              # (D, 3H)
    w1f = _pad2d(_pad_gates(w1_fused, h_out, h_pad), d_pad, 3 * h_pad)
    w2f = _pad2d(_pad_gates(w2_fused, h_out, h_pad), d_pad, 3 * h_pad)
    return dict(
        w12f=jnp.concatenate([w1f, w2f], axis=0),         # (2*d_pad, 3*h_pad)
        whh=_pad2d(_pad_gates(whh_t, h_out, h_pad), h_pad, 3 * h_pad),
        bih=_pad_gates(params["b_ih"].astype(f32).reshape(1, -1), h_out, h_pad),
        bhh=_pad_gates(params["b_hh"].astype(f32).reshape(1, -1), h_out, h_pad),
    )


# ----------------------------------- wrapper ----------------------------------
@functools.partial(jax.jit, static_argnames=("block_m", "block_k", "matmul_dtype"))
def srgnn_layer(A, feat, params, *, block_m=None, block_k=None,
                matmul_dtype=jnp.bfloat16):
    """SRGNNLayer forward.  A: (N, N) dense weighted adjacency A[dst, src],
    feat: (N, D).  Requires input_dim == output_dim (as the PyTorch module
    implicitly does, since the GRU hidden state is `feat` itself)."""
    N, D = feat.shape
    H = params["W_hh"].shape[1]
    assert D == H, "SRGNNLayer requires input_dim == output_dim"
    assert params["W_ih"].shape == (3 * H, 2 * D)

    d_pad = h_pad = _round_up(D + 1, 128)       # +1 lane: fused degree column
    bytes_mm = jnp.dtype(matmul_dtype).itemsize
    bytes_out = jnp.dtype(feat.dtype).itemsize

    # ---- generation-aware tile / VMEM sizing (v5e/v6e: 128 MiB, v7x: 64 MiB) --
    vmem_cap = _vmem_capacity_bytes()
    vmem_budget = int(0.80 * vmem_cap)          # headroom for internal scratch
    if block_m is None:
        block_m = 256 if vmem_cap >= 100 * 2 ** 20 else 128
    tm = int(block_m)
    assert tm % 8 == 0
    n_pad_m = _round_up(N, tm)
    gm = n_pad_m // tm

    # Fixed (non-streamed) VMEM: h, out, weights (double-buffered) + accumulator.
    fixed_bytes = (2 * tm * d_pad * 4 + 2 * tm * h_pad * bytes_out
                   + 2 * ((2 * d_pad + h_pad) * 3 * h_pad + 2 * 3 * h_pad) * 4
                   + tm * 2 * d_pad * 4)
    if block_k is None:
        # Source-axis tile sized so the streamed A / A^T / feat blocks
        # (double-buffered) stay inside the budget -> VMEM bounded for any N.
        stream_budget = max(2 * 2 ** 20, int(0.7 * vmem_budget) - fixed_bytes)
        per_tk_bytes = (2 * 2 * tm + 2 * d_pad) * bytes_mm
        tk_cap = max(128, (stream_budget // per_tk_bytes) // 128 * 128)
        nk128 = _round_up(N, 128)
        gk = -(-nk128 // tk_cap)                # ceil
        tk = _round_up(-(-nk128 // gk), 128)
    else:
        tk = int(block_k)
        assert tk % 128 == 0
        gk = -(-_round_up(N, 128) // tk)
    n_pad_k = gk * tk

    # ---- pad & stage operands (plain XLA, outside the kernel) ----------------
    a32 = A.astype(jnp.float32)
    a_nn = a32.astype(matmul_dtype)             # narrow A once ...
    at_nn = a_nn.T                              # ... transpose in the narrow dtype
    a_mm = _pad2d(a_nn, n_pad_m, n_pad_k)
    at_mm = _pad2d(at_nn, n_pad_m, n_pad_k)

    feat32 = feat.astype(jnp.float32)
    feat_h = _pad2d(feat32, n_pad_m, d_pad)     # f32 GRU hidden-state tiles
    feat_mm = _pad2d(feat32, n_pad_k, d_pad).at[:, D].set(1.0).astype(matmul_dtype)

    p = _pack_params(params, D, H, d_pad, h_pad)

    # ---- cost / VMEM bookkeeping ---------------------------------------------
    flops = (4 * n_pad_m * n_pad_k * d_pad          # two A . feat matmuls
             + 12 * n_pad_m * d_pad * h_pad         # fused gi matmul (K = 2*d_pad)
             + 6 * n_pad_m * h_pad * h_pad)         # hidden matmul
    transcendentals = 3 * n_pad_m * h_pad + 2 * n_pad_m
    bytes_accessed = int(2 * n_pad_m * n_pad_k * bytes_mm
                         + gm * n_pad_k * d_pad * bytes_mm
                         + n_pad_m * d_pad * 4
                         + ((2 * d_pad + h_pad) * 3 * h_pad + 6 * h_pad) * 4
                         + n_pad_m * h_pad * bytes_out)
    vmem_est = (2 * 2 * tm * tk * bytes_mm + 2 * tk * d_pad * bytes_mm + fixed_bytes)
    vmem_limit = int(min(vmem_budget, max(16 * 2 ** 20, 2 * vmem_est)))

    # ---- pallas call -----------------------------------------------------------
    kernel = functools.partial(_srgnn_kernel, d_pad=d_pad, deg_col=D)
    out_pad = pl.pallas_call(
        kernel,
        out_shape=jax.ShapeDtypeStruct((n_pad_m, h_pad), feat.dtype),
        grid_spec=pltpu.PrefetchScalarGridSpec(
            num_scalar_prefetch=0,
            grid=(gm, gk),
            in_specs=[
                pl.BlockSpec((tm, tk), lambda i, k: (i, k)),            # A tile
                pl.BlockSpec((tm, tk), lambda i, k: (i, k)),            # A^T tile
                pl.BlockSpec((tk, d_pad), lambda i, k: (k, 0)),         # [feat | 1]
                pl.BlockSpec((tm, d_pad), lambda i, k: (i, 0)),         # f32 hidden
                pl.BlockSpec((2 * d_pad, 3 * h_pad), lambda i, k: (0, 0)),  # W1|W2
                pl.BlockSpec((h_pad, 3 * h_pad), lambda i, k: (0, 0)),      # W_hh^T
                pl.BlockSpec((1, 3 * h_pad), lambda i, k: (0, 0)),          # b_ih
                pl.BlockSpec((1, 3 * h_pad), lambda i, k: (0, 0)),          # b_hh
            ],
            out_specs=pl.BlockSpec((tm, h_pad), lambda i, k: (i, 0)),
            scratch_shapes=[pltpu.VMEM((tm, 2 * d_pad), jnp.float32)],
        ),
        compiler_params=pltpu.CompilerParams(
            dimension_semantics=("parallel", "arbitrary"),
            vmem_limit_bytes=vmem_limit),
        cost_estimate=pl.CostEstimate(
            flops=flops, transcendentals=transcendentals,
            bytes_accessed=bytes_accessed),
    )(a_mm, at_mm, feat_mm, feat_h,
      p["w12f"], p["whh"], p["bih"], p["bhh"])

    out = out_pad[:N, :H]
    # `if mg.number_of_edges() > 0 ... else rst = feat` branch of the module.
    return jnp.where(jnp.any(a32 != 0.0), out, feat)


# ------------------------------ pure-JAX reference ----------------------------
def srgnn_reference(A, feat, params):
    """Faithful pure-JAX port of the PyTorch SRGNNLayer forward (eval mode)."""
    A = A.astype(jnp.float32)
    feat = feat.astype(jnp.float32)
    H = params["W_hh"].shape[1]

    def mean_pass(adj):
        deg = adj.sum(axis=1, keepdims=True)
        return jnp.where(deg > 0, (adj @ feat) / jnp.where(deg > 0, deg, 1.0), 0.0)

    neigh1 = mean_pass(A)
    neigh2 = mean_pass(A.T)
    x = jnp.concatenate([neigh1 @ params["W1"].T, neigh2 @ params["W2"].T], axis=1)
    gi = x @ params["W_ih"].T + params["b_ih"]
    gh = feat @ params["W_hh"].T + params["b_hh"]
    r = jax.nn.sigmoid(gi[:, :H] + gh[:, :H])
    z = jax.nn.sigmoid(gi[:, H:2 * H] + gh[:, H:2 * H])
    n = jnp.tanh(gi[:, 2 * H:] + r * gh[:, 2 * H:])
    out = (1.0 - z) * n + z * feat
    return jnp.where(jnp.any(A != 0.0), out, feat)


def init_params(key, input_dim, output_dim):
    """PyTorch-shaped parameters (W1/W2 Linear no-bias, GRUCell)."""
    ks = jax.random.split(key, 6)
    lin_b = 1.0 / math.sqrt(input_dim)
    gru_b = 1.0 / math.sqrt(output_dim)
    u = jax.random.uniform
    return {
        "W1": u(ks[0], (output_dim, input_dim), jnp.float32, -lin_b, lin_b),
        "W2": u(ks[1], (output_dim, input_dim), jnp.float32, -lin_b, lin_b),
        "W_ih": u(ks[2], (3 * output_dim, 2 * input_dim), jnp.float32, -gru_b, gru_b),
        "W_hh": u(ks[3], (3 * output_dim, output_dim), jnp.float32, -gru_b, gru_b),
        "b_ih": u(ks[4], (3 * output_dim,), jnp.float32, -gru_b, gru_b),
        "b_hh": u(ks[5], (3 * output_dim,), jnp.float32, -gru_b, gru_b),
    }


if __name__ == "__main__":
    key = jax.random.PRNGKey(0)
    N, D = 200, 96          # session-graph nodes, feature dim (input_dim == output_dim)
    k_feat, k_adj, k_param = jax.random.split(key, 3)

    feat = jax.random.normal(k_feat, (N, D), jnp.float32)

    # Deterministic sparse weighted adjacency, A[dst, src] = w, no self loops.
    raw = jax.random.uniform(k_adj, (N, N), jnp.float32)
    mask = (raw > 0.8) & (~jnp.eye(N, dtype=bool))
    A = jnp.where(mask, raw, 0.0)
    A = A.at[3, :].set(0.0)      # node 3: zero in-degree on the forward graph
    A = A.at[:, 5].set(0.0)      # node 5: zero in-degree on the reversed graph

    params = init_params(k_param, D, D)
    ref = srgnn_reference(A, feat, params)

    # Default path: bf16 A / A^T / [feat|1] on the MXU with f32 accumulation,
    # generation-aware auto tiles (single grid step at this size).
    out_bf16 = jax.block_until_ready(srgnn_layer(A, feat, params))
    assert out_bf16.shape == (N, D)
    assert bool(jnp.all(jnp.isfinite(out_bf16)))
    assert jnp.allclose(out_bf16, ref, atol=3e-2, rtol=3e-2), "bf16 path mismatch"

    # f32 path with explicit row + source (K) tiling -> grid (2, 2), exercising
    # the accumulator / pl.when epilogue pipeline.
    out_f32 = jax.block_until_ready(
        srgnn_layer(A, feat, params, block_m=128, block_k=128,
                    matmul_dtype=jnp.float32))
    assert jnp.allclose(out_f32, ref, atol=5e-3, rtol=5e-3), "f32 path mismatch"

    # Zero-edge graph falls back to `rst = feat` exactly (module's else branch).
    out_zero = jax.block_until_ready(srgnn_layer(jnp.zeros_like(A), feat, params))
    assert jnp.allclose(out_zero, feat)

    print("KERNEL_OK")
</pallas_src>

<mosaic_0001>
module attributes {stable_mosaic.version = 11 : i64} {
  func.func @_srgnn_kernel(%arg0: i32, %arg1: i32, %arg2: memref<128x256xbf16, #tpu.memory_space<vmem>>, %arg3: memref<128x256xbf16, #tpu.memory_space<vmem>>, %arg4: memref<256x128xbf16, #tpu.memory_space<vmem>>, %arg5: memref<128x128xf32, #tpu.memory_space<vmem>>, %arg6: memref<256x384xf32, #tpu.memory_space<vmem>>, %arg7: memref<128x384xf32, #tpu.memory_space<vmem>>, %arg8: memref<1x384xf32, #tpu.memory_space<vmem>>, %arg9: memref<1x384xf32, #tpu.memory_space<vmem>>, %arg10: memref<128x128xf32, #tpu.memory_space<vmem>>, %arg11: memref<128x256xf32, #tpu.memory_space<vmem>>) attributes {dimension_semantics = [#tpu.dimension_semantics<parallel>, #tpu.dimension_semantics<arbitrary>], iteration_bounds = array<i64: 2, 1>, scalar_prefetch = 0 : i64, scratch_operands = 1 : i64, tpu.core_type = #tpu.core_type<tc>, window_params = [{transform_indices = @transform_0, window_bounds = array<i64: 128, 256>}, {transform_indices = @transform_1, window_bounds = array<i64: 128, 256>}, {transform_indices = @transform_2, window_bounds = array<i64: 256, 128>}, {transform_indices = @transform_3, window_bounds = array<i64: 128, 128>}, {pipeline_mode = #tpu.pipeline_mode<synchronous>, transform_indices = @transform_4, window_bounds = array<i64: 256, 384>}, {pipeline_mode = #tpu.pipeline_mode<synchronous>, transform_indices = @transform_5, window_bounds = array<i64: 128, 384>}, {pipeline_mode = #tpu.pipeline_mode<synchronous>, transform_indices = @transform_6, window_bounds = array<i64: 1, 384>}, {pipeline_mode = #tpu.pipeline_mode<synchronous>, transform_indices = @transform_7, window_bounds = array<i64: 1, 384>}, {transform_indices = @transform_8, window_bounds = array<i64: 128, 128>}]} {
    %c0_i32 = arith.constant 0 : i32
    %0 = arith.cmpi eq, %arg1, %c0_i32 : i32
    %1 = arith.extui %0 : i1 to i32
    %c0_i32_0 = arith.constant 0 : i32
    %2 = arith.cmpi ne, %1, %c0_i32_0 : i32
    scf.if %2 {
      %cst_16 = arith.constant 0.000000e+00 : f32
      %17 = vector.broadcast %cst_16 : f32 to vector<128x256xf32>
      %c0_17 = arith.constant 0 : index
      %c0_18 = arith.constant 0 : index
      %18 = vector.load %arg11[%c0_17, %c0_18] : memref<128x256xf32, #tpu.memory_space<vmem>>, vector<128x256xf32>
      tpu.vector_store %arg11[%c0_17, %c0_18], %17 {strides = array<i32>} : memref<128x256xf32, #tpu.memory_space<vmem>>, vector<128x256xf32>,
    } else {
    }
    %c0 = arith.constant 0 : index
    %c0_1 = arith.constant 0 : index
    %3 = vector.load %arg4[%c0, %c0_1] : memref<256x128xbf16, #tpu.memory_space<vmem>>, vector<256x128xbf16>
    %c0_2 = arith.constant 0 : index
    %c0_3 = arith.constant 0 : index
    %4 = vector.load %arg11[%c0_2, %c0_3] : memref<128x256xf32, #tpu.memory_space<vmem>>, vector<128x128xf32>
    %c0_4 = arith.constant 0 : index
    %c0_5 = arith.constant 0 : index
    %5 = vector.load %arg2[%c0_4, %c0_5] : memref<128x256xbf16, #tpu.memory_space<vmem>>, vector<128x256xbf16>
    %cst = arith.constant dense<0.000000e+00> : vector<128x128xf32>
    %6 = tpu.matmul %5, %3, %cst {dimension_numbers = #tpu.dot_dimension_numbers<[1], [0], [0], [1], [0, 0, 1, 1], [], []>} : vector<128x256xbf16>, vector<256x128xbf16>, vector<128x128xf32> -> vector<128x128xf32>
    %7 = arith.addf %4, %6 : vector<128x128xf32>
    %c0_6 = arith.constant 0 : index
    %c0_7 = arith.constant 0 : index
    %8 = vector.load %arg11[%c0_6, %c0_7] : memref<128x256xf32, #tpu.memory_space<vmem>>, vector<128x128xf32>
    tpu.vector_store %arg11[%c0_6, %c0_7], %7 {strides = array<i32>} : memref<128x256xf32, #tpu.memory_space<vmem>>, vector<128x128xf32>,
    %c0_8 = arith.constant 0 : index
    %c128 = arith.constant 128 : index
    %9 = vector.load %arg11[%c0_8, %c128] : memref<128x256xf32, #tpu.memory_space<vmem>>, vector<128x128xf32>
    %c0_9 = arith.constant 0 : index
    %c0_10 = arith.constant 0 : index
    %10 = vector.load %arg3[%c0_9, %c0_10] : memref<128x256xbf16, #tpu.memory_space<vmem>>, vector<128x256xbf16>
    %cst_11 = arith.constant dense<0.000000e+00> : vector<128x128xf32>
    %11 = tpu.matmul %10, %3, %cst_11 {dimension_numbers = #tpu.dot_dimension_numbers<[1], [0], [0], [1], [0, 0, 1, 1], [], []>} : vector<128x256xbf16>, vector<256x128xbf16>, vector<128x128xf32> -> vector<128x128xf32>
    %12 = arith.addf %9, %11 : vector<128x128xf32>
    %c0_12 = arith.constant 0 : index
    %c128_13 = arith.constant 128 : index
    %13 = vector.load %arg11[%c0_12, %c128_13] : memref<128x256xf32, #tpu.memory_space<vmem>>, vector<128x128xf32>
    tpu.vector_store %arg11[%c0_12, %c128_13], %12 {strides = array<i32>} : memref<128x256xf32, #tpu.memory_space<vmem>>, vector<128x128xf32>,
    %c0_i32_14 = arith.constant 0 : i32
    %14 = arith.cmpi eq, %arg1, %c0_i32_14 : i32
    %15 = arith.extui %14 : i1 to i32
    %c0_i32_15 = arith.constant 0 : i32
    %16 = arith.cmpi ne, %15, %c0_i32_15 : i32
    scf.if %16 {
      %c0_16 = arith.constant 0 : index
      %c0_17 = arith.constant 0 : index
      %17 = vector.load %arg11[%c0_16, %c0_17] : memref<128x256xf32, #tpu.memory_space<vmem>>, vector<128x128xf32>
      %c0_18 = arith.constant 0 : index
      %c128_19 = arith.constant 128 : index
      %18 = vector.load %arg11[%c0_18, %c128_19] : memref<128x256xf32, #tpu.memory_space<vmem>>, vector<128x128xf32>
      %19 = vector.extract_strided_slice %17 {offsets = [0, 96], sizes = [128, 1], strides = [1, 1]} : vector<128x128xf32> to vector<128x1xf32>
      %20 = vector.extract_strided_slice %18 {offsets = [0, 96], sizes = [128, 1], strides = [1, 1]} : vector<128x128xf32> to vector<128x1xf32>
      %cst_20 = arith.constant 0.000000e+00 : f32
      %21 = vector.broadcast %cst_20 : f32 to vector<128x1xf32>
      %22 = arith.cmpf ogt, %19, %21 : vector<128x1xf32>
      %cst_21 = arith.constant 0.000000e+00 : f32
      %23 = vector.broadcast %cst_21 : f32 to vector<128x1xf32>
      %24 = arith.cmpf ogt, %19, %23 : vector<128x1xf32>
      %cst_22 = arith.constant 1.000000e+00 : f32
      %25 = vector.broadcast %cst_22 : f32 to vector<128x1xf32>
      %26 = arith.select %24, %19, %25 : vector<128x1xi1>, vector<128x1xf32>
      %cst_23 = arith.constant 1.000000e+00 : f32
      %27 = vector.broadcast %cst_23 : f32 to vector<128x1xf32>
      %28 = arith.divf %27, %26 : vector<128x1xf32>
      %cst_24 = arith.constant 0.000000e+00 : f32
      %29 = vector.broadcast %cst_24 : f32 to vector<128x1xf32>
      %30 = arith.select %22, %28, %29 : vector<128x1xi1>, vector<128x1xf32>
      %cst_25 = arith.constant 0.000000e+00 : f32
      %31 = vector.broadcast %cst_25 : f32 to vector<128x1xf32>
      %32 = arith.cmpf ogt, %20, %31 : vector<128x1xf32>
      %cst_26 = arith.constant 0.000000e+00 : f32
      %33 = vector.broadcast %cst_26 : f32 to vector<128x1xf32>
      %34 = arith.cmpf ogt, %20, %33 : vector<128x1xf32>
      %cst_27 = arith.constant 1.000000e+00 : f32
      %35 = vector.broadcast %cst_27 : f32 to vector<128x1xf32>
      %36 = arith.select %34, %20, %35 : vector<128x1xi1>, vector<128x1xf32>
      %cst_28 = arith.constant 1.000000e+00 : f32
      %37 = vector.broadcast %cst_28 : f32 to vector<128x1xf32>
      %38 = arith.divf %37, %36 : vector<128x1xf32>
      %cst_29 = arith.constant 0.000000e+00 : f32
      %39 = vector.broadcast %cst_29 : f32 to vector<128x1xf32>
      %40 = arith.select %32, %38, %39 : vector<128x1xi1>, vector<128x1xf32>
      %41 = vector.broadcast %30 : vector<128x1xf32> to vector<128x128xf32>
      %42 = arith.mulf %17, %41 : vector<128x128xf32>
      %c0_30 = arith.constant 0 : index
      %c0_31 = arith.constant 0 : index
      %43 = vector.load %arg11[%c0_30, %c0_31] : memref<128x256xf32, #tpu.memory_space<vmem>>, vector<128x128xf32>
      tpu.vector_store %arg11[%c0_30, %c0_31], %42 {strides = array<i32>} : memref<128x256xf32, #tpu.memory_space<vmem>>, vector<128x128xf32>,
      %44 = vector.broadcast %40 : vector<128x1xf32> to vector<128x128xf32>
      %45 = arith.mulf %18, %44 : vector<128x128xf32>
      %c0_32 = arith.constant 0 : index
      %c128_33 = arith.constant 128 : index
      %46 = vector.load %arg11[%c0_32, %c128_33] : memref<128x256xf32, #tpu.memory_space<vmem>>, vector<128x128xf32>
      tpu.vector_store %arg11[%c0_32, %c128_33], %45 {strides = array<i32>} : memref<128x256xf32, #tpu.memory_space<vmem>>, vector<128x128xf32>,
      %c0_34 = arith.constant 0 : index
      %c0_35 = arith.constant 0 : index
      %47 = vector.load %arg11[%c0_34, %c0_35] : memref<128x256xf32, #tpu.memory_space<vmem>>, vector<128x256xf32>
      %c0_36 = arith.constant 0 : index
      %c0_37 = arith.constant 0 : index
      %48 = vector.load %arg6[%c0_36, %c0_37] : memref<256x384xf32, #tpu.memory_space<vmem>>, vector<256x384xf32>
      %cst_38 = arith.constant dense<0.000000e+00> : vector<128x384xf32>
      %49 = tpu.matmul %47, %48, %cst_38 {dimension_numbers = #tpu.dot_dimension_numbers<[1], [0], [0], [1], [0, 0, 1, 1], [], []>} : vector<128x256xf32>, vector<256x384xf32>, vector<128x384xf32> -> vector<128x384xf32>
      %c0_39 = arith.constant 0 : index
      %c0_40 = arith.constant 0 : index
      %50 = vector.load %arg8[%c0_39, %c0_40] : memref<1x384xf32, #tpu.memory_space<vmem>>, vector<1x384xf32>
      %51 = vector.broadcast %50 : vector<1x384xf32> to vector<128x384xf32>
      %52 = arith.addf %49, %51 : vector<128x384xf32>
      %c0_41 = arith.constant 0 : index
      %c0_42 = arith.constant 0 : index
      %53 = vector.load %arg5[%c0_41, %c0_42] : memref<128x128xf32, #tpu.memory_space<vmem>>, vector<128x128xf32>
      %c0_43 = arith.constant 0 : index
      %c0_44 = arith.constant 0 : index
      %54 = vector.load %arg7[%c0_43, %c0_44] : memref<128x384xf32, #tpu.memory_space<vmem>>, vector<128x384xf32>
      %cst_45 = arith.constant dense<0.000000e+00> : vector<128x384xf32>
      %55 = tpu.matmul %53, %54, %cst_45 {dimension_numbers = #tpu.dot_dimension_numbers<[1], [0], [0], [1], [0, 0, 1, 1], [], []>} : vector<128x128xf32>, vector<128x384xf32>, vector<128x384xf32> -> vector<128x384xf32>
      %c0_46 = arith.constant 0 : index
      %c0_47 = arith.constant 0 : index
      %56 = vector.load %arg9[%c0_46, %c0_47] : memref<1x384xf32, #tpu.memory_space<vmem>>, vector<1x384xf32>
      %57 = vector.broadcast %56 : vector<1x384xf32> to vector<128x384xf32>
      %58 = arith.addf %55, %57 : vector<128x384xf32>
      %59 = vector.extract_strided_slice %52 {offsets = [0, 0], sizes = [128, 128], strides = [1, 1]} : vector<128x384xf32> to vector<128x128xf32>
      %60 = vector.extract_strided_slice %58 {offsets = [0, 0], sizes = [128, 128], strides = [1, 1]} : vector<128x384xf32> to vector<128x128xf32>
      %61 = arith.addf %59, %60 : vector<128x128xf32>
      %62 = arith.negf %61 : vector<128x128xf32>
      %63 = math.exp %62 : vector<128x128xf32>
      %cst_48 = arith.constant 1.000000e+00 : f32
      %64 = vector.broadcast %cst_48 : f32 to vector<128x128xf32>
      %65 = arith.addf %64, %63 : vector<128x128xf32>
      %66 = arith.divf %64, %65 : vector<128x128xf32>
      %67 = vector.extract_strided_slice %52 {offsets = [0, 128], sizes = [128, 128], strides = [1, 1]} : vector<128x384xf32> to vector<128x128xf32>
      %68 = vector.extract_strided_slice %58 {offsets = [0, 128], sizes = [128, 128], strides = [1, 1]} : vector<128x384xf32> to vector<128x128xf32>
      %69 = arith.addf %67, %68 : vector<128x128xf32>
      %70 = arith.negf %69 : vector<128x128xf32>
      %71 = math.exp %70 : vector<128x128xf32>
      %cst_49 = arith.constant 1.000000e+00 : f32
      %72 = vector.broadcast %cst_49 : f32 to vector<128x128xf32>
      %73 = arith.addf %72, %71 : vector<128x128xf32>
      %74 = arith.divf %72, %73 : vector<128x128xf32>
      %75 = vector.extract_strided_slice %52 {offsets = [0, 256], sizes = [128, 128], strides = [1, 1]} : vector<128x384xf32> to vector<128x128xf32>
      %76 = vector.extract_strided_slice %58 {offsets = [0, 256], sizes = [128, 128], strides = [1, 1]} : vector<128x384xf32> to vector<128x128xf32>
      %77 = arith.mulf %66, %76 : vector<128x128xf32>
      %78 = arith.addf %75, %77 : vector<128x128xf32>
      %79 = math.tanh %78 : vector<128x128xf32>
      %cst_50 = arith.constant 1.000000e+00 : f32
      %80 = vector.broadcast %cst_50 : f32 to vector<128x128xf32>
      %81 = arith.subf %80, %74 : vector<128x128xf32>
      %82 = arith.mulf %81, %79 : vector<128x128xf32>
      %83 = arith.mulf %74, %53 : vector<128x128xf32>
      %84 = arith.addf %82, %83 : vector<128x128xf32>
      %c0_51 = arith.constant 0 : index
      %c0_52 = arith.constant 0 : index
      %85 = vector.load %arg10[%c0_51, %c0_52] : memref<128x128xf32, #tpu.memory_space<vmem>>, vector<128x128xf32>
      tpu.vector_store %arg10[%c0_51, %c0_52], %84 {strides = array<i32>} : memref<128x128xf32, #tpu.memory_space<vmem>>, vector<128x128xf32>,
    } else {
    }
    return
  }
  func.func @transform_0(%arg0: i32, %arg1: i32) -> (i32, i32) {
    %c0_i32 = arith.constant 0 : i32
    return %arg0, %arg1 : i32, i32
  }
  func.func @transform_1(%arg0: i32, %arg1: i32) -> (i32, i32) {
    %c0_i32 = arith.constant 0 : i32
    return %arg0, %arg1 : i32, i32
  }
  func.func @transform_2(%arg0: i32, %arg1: i32) -> (i32, i32) {
    %c0_i32 = arith.constant 0 : i32
    %c0_i32_0 = arith.constant 0 : i32
    return %arg1, %c0_i32 : i32, i32
  }
  func.func @transform_3(%arg0: i32, %arg1: i32) -> (i32, i32) {
    %c0_i32 = arith.constant 0 : i32
    %c0_i32_0 = arith.constant 0 : i32
    return %arg0, %c0_i32 : i32, i32
  }
  func.func @transform_4(%arg0: i32, %arg1: i32) -> (i32, i32) {
    %c0_i32 = arith.constant 0 : i32
    %c0_i32_0 = arith.constant 0 : i32
    %c0_i32_1 = arith.constant 0 : i32
    return %c0_i32, %c0_i32_0 : i32, i32
  }
  func.func @transform_5(%arg0: i32, %arg1: i32) -> (i32, i32) {
    %c0_i32 = arith.constant 0 : i32
    %c0_i32_0 = arith.constant 0 : i32
    %c0_i32_1 = arith.constant 0 : i32
    return %c0_i32, %c0_i32_0 : i32, i32
  }
  func.func @transform_6(%arg0: i32, %arg1: i32) -> (i32, i32) {
    %c0_i32 = arith.constant 0 : i32
    %c0_i32_0 = arith.constant 0 : i32
    %c0_i32_1 = arith.constant 0 : i32
    return %c0_i32, %c0_i32_0 : i32, i32
  }
  func.func @transform_7(%arg0: i32, %arg1: i32) -> (i32, i32) {
    %c0_i32 = arith.constant 0 : i32
    %c0_i32_0 = arith.constant 0 : i32
    %c0_i32_1 = arith.constant 0 : i32
    return %c0_i32, %c0_i32_0 : i32, i32
  }
  func.func @transform_8(%arg0: i32, %arg1: i32) -> (i32, i32) {
    %c0_i32 = arith.constant 0 : i32
    %c0_i32_0 = arith.constant 0 : i32
    return %arg0, %c0_i32 : i32, i32
  }
}

</mosaic_0001>

<bundles_post_ra>
// kernel: srgnn_layer.1
= control target key start
LH: loop header
LB: loop body
LE: loop exit
PB: predicated region body
PF: predicated region fallthrough
CT: control target
= control target key end

     0   :  { %s3591_s27 = smov 0   ;;  %s3593_s28 = smov 0   ;;  %s4901_s0 = inlined_call_operand.vmem [shape: bf16[256,256], index: 0, kind: input, shape index: {}]   ;;  %s4902_s1 = inlined_call_operand.vmem [shape: bf16[256,256], index: 1, kind: input, shape index: {}]   ;;  %s4903_s2 = inlined_call_operand.vmem [shape: bf16[256,128], index: 2, kind: input, shape index: {}]   ;;  %s4904_s3 = inlined_call_operand.vmem [shape: f32[256,128], index: 3, kind: input, shape index: {}]   ;;  %s4905_s4 = inlined_call_operand.vmem [shape: f32[256,384], index: 4, kind: input, shape index: {}]   ;;  %s4906_s5 = inlined_call_operand.vmem [shape: f32[128,384], index: 5, kind: input, shape index: {}]   ;;  %s4907_s6 = inlined_call_operand.vmem [shape: f32[1,384], index: 6, kind: input, shape index: {}]   ;;  %s4908_s7 = inlined_call_operand.vmem [shape: f32[1,384], index: 7, kind: input, shape index: {}]   ;;  %s4909_s8 = inlined_call_operand.vmem [shape: f32[256,128], index: 8, kind: output, shape index: {}]  }
   0x1   :  { %s3595_s29 = smov 0  }
   0x2 LB: > { %s30_s30 = sadd.s32 1, %s3538_s28  ;;  %p2802_p0 = scmp.ge.s32.totalorder %s3542_s29, 1  ;;  %s3542_s29 = sphi %s3595_s29, %s18_s29   ;;  %s3538_s28 = sphi %s3593_s28, %s4947_s28   ;;  %s3534_s27 = sphi %s3591_s27, %s4946_s27  }
   0x3   : > { %p32_p1 = scmp.ge.s32.totalorder %s30_s30, 2  ;;  %p324_p2 = scmp.lt.s32.totalorder %s3542_s29, 3 }
   0x5   : > { %s4949_s30 = smov (%p32_p1, %s30_s30), 0  ;;  %p325_p3 = pnand %p2802_p0, %p324_p2 }
   0x7   : > { %328 = sbr.rel (%p325_p3) target bundleno = 777 (0x309), region = 52 }
   0xc   : > { %v3221_v0 = vld [vmem:[%s4903_s2 + $0x78] sm:$0xff]   ;;  %s2803_s11 = sshll.u32 %s3534_s27, 4  ;;  %v3223_v2 = vld [vmem:[%s4903_s2 + $0x70] sm:$0xff]   ;;  %v3225_v4 = vld [vmem:[%s4903_s2 + $0x68] sm:$0xff]   ;;  %v3544_v48 = vmov 96  }
   0xd   : > { %v3222_v1 = vld [vmem:[%s4903_s2 + $0x38] sm:$0xff]   ;;  %2897 = vmatprep.subr.bf16.mxu0 %v3221_v0  ;;  %2961 = vmatprep.subr.bf16.mxu1 %v3221_v0  ;;  %v3224_v3 = vld [vmem:[%s4903_s2 + $0x30] sm:$0xff]   ;;  %p385_p4 = scmp.lt.s32.totalorder %s2803_s11, 31  ;;  %v3226_v5 = vld [vmem:[%s4903_s2 + $0x28] sm:$0xff]  }
   0xe   : > { %2898 = vmatpush3.bf16.msra.mxu0 %v3222_v1  ;;  %2962 = vmatpush3.bf16.msra.mxu1 %v3222_v1  ;;  %v3227_v6 = vld [vmem:[%s4903_s2 + $0x60] sm:$0xff]   ;;  %v3229_v8 = vld [vmem:[%s4903_s2 + $0x58] sm:$0xff]   ;;  %v3231_v10 = vld [vmem:[%s4903_s2 + $0x50] sm:$0xff]  }
   0xf   : > { %2899 = vmatprep.subr.bf16.mxu0 %v3223_v2  ;;  %2963 = vmatprep.subr.bf16.mxu1 %v3223_v2  ;;  %s4951_s11 = smov (!%p385_p4, %s2803_s11), 31  ;;  %v3228_v7 = vld [vmem:[%s4903_s2 + $0x20] sm:$0xff]   ;;  %v3230_v9 = vld [vmem:[%s4903_s2 + $0x18] sm:$0xff]   ;;  %v3232_v13 = vld [vmem:[%s4903_s2 + $0x10] sm:$0xff]  }
  0x10   : > { %s3633_s26 = sshll.u32 %s4951_s11, 3  ;;  %v3233_v14 = vld [vmem:[%s4903_s2 + $0x48] sm:$0xff]   ;;  %v3235_v16 = vld [vmem:[%s4903_s2 + $0x40] sm:$0xff]   ;;  %3219 = vset.pattern.permute.xlu0 %v3544_v48  ;;  %3220 = vset.pattern.permute.xlu1 %v3544_v48  ;;  %v1569_v49 = vld [vmem:[%s4905_s4 + $0x170] sm:$0xff] }
  0x11   : > { %s3642_s13 = scalar_lea.vmem %s4901_s0, %s3633_s26  ;;  %s3651_s17 = scalar_lea.vmem %s4902_s1, %s3633_s26  ;;  %v3234_v15 = vld [vmem:[%s4903_s2 + $0x8] sm:$0xff]   ;;  %v3236_v17 = vld [vmem:[%s4903_s2] sm:$0xff]   ;;  %v1566_v51 = vld [vmem:[%s4905_s4 + $0x158] sm:$0xff] }
  0x12   : > { %2900 = vmatpush3.bf16.msra.mxu0 %v3224_v3  ;;  %2964 = vmatpush3.bf16.msra.mxu1 %v3224_v3  ;;  %v3239_v11 = vld [vmem:[%s3642_s13 + $0x4] ss:$8 sps:$4 sm:$0xff]   ;;  %v3237_v18 = vld [vmem:[%s3642_s13] ss:$8 sps:$4 sm:$0xff]   ;;  %v3243_v20 = vld [vmem:[%s3642_s13 + $0x14] ss:$8 sps:$4 sm:$0xff]   ;;  %s4424_s14 = scalar_lea.vmem %s4904_s3, %s3633_s26  ;;  %s4801_s21 = scalar_lea.vmem %s4909_s8, %s3633_s26 }
  0x13   : > { %2901 = vmatprep.subr.bf16.mxu0 %v3225_v4  ;;  %2965 = vmatprep.subr.bf16.mxu1 %v3225_v4  ;;  %v3242_v12 = vld [vmem:[%s3651_s17 + $0x4] ss:$8 sps:$4 sm:$0xff]   ;;  %v3240_v19 = vld [vmem:[%s3651_s17] ss:$8 sps:$4 sm:$0xff]   ;;  %v3245_v21 = vld [vmem:[%s3651_s17 + $0x14] ss:$8 sps:$4 sm:$0xff]  }
  0x14   : > { %734 = vmatprep.mubr.bf16.mxu0 %v3239_v11  ;;  %975 = vmatprep.mubr.bf16.mxu1 %v3242_v12  ;;  %v3247_v22 = vld [vmem:[%s3642_s13 + $0x10] ss:$8 sps:$4 sm:$0xff]   ;;  %v3249_v24 = vld [vmem:[%s3642_s13 + $0x24] ss:$8 sps:$4 sm:$0xff]   ;;  %v3253_v26 = vld [vmem:[%s3642_s13 + $0x20] ss:$8 sps:$4 sm:$0xff]  }
  0x15   : > { %v3248_v23 = vld [vmem:[%s3651_s17 + $0x10] ss:$8 sps:$4 sm:$0xff]   ;;  %v3251_v25 = vld [vmem:[%s3651_s17 + $0x24] ss:$8 sps:$4 sm:$0xff]   ;;  %v3254_v27 = vld [vmem:[%s3651_s17 + $0x20] ss:$8 sps:$4 sm:$0xff]  }
  0x16   : > { %2902 = vmatpush3.bf16.msra.mxu0 %v3226_v5  ;;  %2966 = vmatpush3.bf16.msra.mxu1 %v3226_v5  ;;  %v3255_v28 = vld [vmem:[%s3642_s13 + $0x34] ss:$8 sps:$4 sm:$0xff]   ;;  %v3259_v30 = vld [vmem:[%s3642_s13 + $0x30] ss:$8 sps:$4 sm:$0xff]   ;;  %v3261_v32 = vld [vmem:[%s3642_s13 + $0x44] ss:$8 sps:$4 sm:$0xff]  }
  0x17   : > { %2903 = vmatprep.subr.bf16.mxu0 %v3227_v6  ;;  %2967 = vmatprep.subr.bf16.mxu1 %v3227_v6  ;;  %v3257_v29 = vld [vmem:[%s3651_s17 + $0x34] ss:$8 sps:$4 sm:$0xff]   ;;  %v3260_v31 = vld [vmem:[%s3651_s17 + $0x30] ss:$8 sps:$4 sm:$0xff]   ;;  %v3263_v33 = vld [vmem:[%s3651_s17 + $0x44] ss:$8 sps:$4 sm:$0xff]  }
  0x18   : > { %v3265_v34 = vld [vmem:[%s3642_s13 + $0x40] ss:$8 sps:$4 sm:$0xff]   ;;  %v3267_v36 = vld [vmem:[%s3642_s13 + $0x54] ss:$8 sps:$4 sm:$0xff]   ;;  %v3271_v38 = vld [vmem:[%s3642_s13 + $0x50] ss:$8 sps:$4 sm:$0xff]  }
  0x19   : > { %v3266_v35 = vld [vmem:[%s3651_s17 + $0x40] ss:$8 sps:$4 sm:$0xff]   ;;  %v3269_v37 = vld [vmem:[%s3651_s17 + $0x54] ss:$8 sps:$4 sm:$0xff]   ;;  %v3272_v39 = vld [vmem:[%s3651_s17 + $0x50] ss:$8 sps:$4 sm:$0xff]  }
  0x1a   : > { %2904 = vmatpush3.bf16.msra.mxu0 %v3228_v7  ;;  %2968 = vmatpush3.bf16.msra.mxu1 %v3228_v7  ;;  %v3273_v40 = vld [vmem:[%s3642_s13 + $0x64] ss:$8 sps:$4 sm:$0xff]   ;;  %v3277_v42 = vld [vmem:[%s3642_s13 + $0x60] ss:$8 sps:$4 sm:$0xff]   ;;  %v3279_v44 = vld [vmem:[%s3642_s13 + $0x74] ss:$8 sps:$4 sm:$0xff]  }
  0x1b   : > { %2905 = vmatprep.subr.bf16.mxu0 %v3229_v8  ;;  %2969 = vmatprep.subr.bf16.mxu1 %v3229_v8  ;;  %v3275_v41 = vld [vmem:[%s3651_s17 + $0x64] ss:$8 sps:$4 sm:$0xff]   ;;  %v3278_v43 = vld [vmem:[%s3651_s17 + $0x60] ss:$8 sps:$4 sm:$0xff]   ;;  %v3281_v45 = vld [vmem:[%s3651_s17 + $0x74] ss:$8 sps:$4 sm:$0xff]  }
  0x1c   : > { %v3283_v46 = vld [vmem:[%s3642_s13 + $0x70] ss:$8 sps:$4 sm:$0xff]   ;;  %v1568_v50 = vld [vmem:[%s4905_s4 + $0x168] sm:$0xff]  ;;  %v1563_v53 = vld [vmem:[%s4905_s4 + $0x140] sm:$0xff] }
  0x1d   : > { %v3284_v47 = vld [vmem:[%s3651_s17 + $0x70] ss:$8 sps:$4 sm:$0xff]   ;;  %v1560_v55 = vld [vmem:[%s4905_s4 + $0x128] sm:$0xff]  ;;  %v1559_v56 = vld [vmem:[%s4905_s4 + $0x120] sm:$0xff] }
  0x1e   : > { %2906 = vmatpush3.bf16.msra.mxu0 %v3230_v9  ;;  %2970 = vmatpush3.bf16.msra.mxu1 %v3230_v9  ;;  %v1565_v52 = vld [vmem:[%s4905_s4 + $0x150] sm:$0xff]  ;;  %v1562_v54 = vld [vmem:[%s4905_s4 + $0x138] sm:$0xff]  ;;  %v1556_v58 = vld [vmem:[%s4905_s4 + $0x108] sm:$0xff] }
  0x1f   : > { %2907 = vmatprep.subr.bf16.mxu0 %v3231_v10  ;;  %2971 = vmatprep.subr.bf16.mxu1 %v3231_v10  ;;  %v1557_v57 = vld [vmem:[%s4905_s4 + $0x110] sm:$0xff]  ;;  %v1554_v59 = vld [vmem:[%s4905_s4 + $0xf8] sm:$0xff]  ;;  %v1551_v61 = vld [vmem:[%s4905_s4 + $0xe0] sm:$0xff] }
  0x20   : > { %v1553_v60 = vld [vmem:[%s4905_s4 + $0xf0] sm:$0xff]  ;;  %v1550_v62 = vld [vmem:[%s4905_s4 + $0xd8] sm:$0xff]  ;;  %v1548_v0 = vld [vmem:[%s4905_s4 + $0xc8] sm:$0xff] }
  0x21   : > { %v1618_v63 = vld [vmem:[%s4905_s4 + $0x2f8] sm:$0xff]  ;;  %v1615_v2 = vld [vmem:[%s4905_s4 + $0x2e0] sm:$0xff]  ;;  %v1545_v5 = vld [vmem:[%s4905_s4 + $0xb0] sm:$0xff] }
  0x22   : > { %2908 = vmatpush3.bf16.msra.mxu0 %v3232_v13  ;;  %2972 = vmatpush3.bf16.msra.mxu1 %v3232_v13  ;;  %v1570_v1 = vld [vmem:[%s4905_s4 + $0x178] sm:$0xff]  ;;  %v1547_v3 = vld [vmem:[%s4905_s4 + $0xc0] sm:$0xff]  ;;  %v1612_v6 = vld [vmem:[%s4905_s4 + $0x2c8] sm:$0xff] }
  0x23   : > { %2909 = vmatprep.subr.bf16.mxu0 %v3233_v14  ;;  %2973 = vmatprep.subr.bf16.mxu1 %v3233_v14  ;;  %v1567_v4 = vld [vmem:[%s4905_s4 + $0x160] sm:$0xff]  ;;  %v1564_v7 = vld [vmem:[%s4905_s4 + $0x148] sm:$0xff]  ;;  %v1609_v9 = vld [vmem:[%s4905_s4 + $0x2b0] sm:$0xff] }
  0x24   : > { %v1544_v8 = vld [vmem:[%s4905_s4 + $0xa8] sm:$0xff]  ;;  %v1542_v10 = vld [vmem:[%s4905_s4 + $0x98] sm:$0xff]  ;;  %v1561_v11 = vld [vmem:[%s4905_s4 + $0x130] sm:$0xff] }
  0x25   : > { %v1541_v12 = vld [vmem:[%s4905_s4 + $0x90] sm:$0xff]  ;;  %v1606_v13 = vld [vmem:[%s4905_s4 + $0x298] sm:$0xff]  ;;  %v1539_v14 = vld [vmem:[%s4905_s4 + $0x80] sm:$0xff] }
  0x26   : > { %2910 = vmatpush3.bf16.msra.mxu0 %v3234_v15  ;;  %2974 = vmatpush3.bf16.msra.mxu1 %v3234_v15  ;;  %v1558_v15 = vld [vmem:[%s4905_s4 + $0x118] sm:$0xff] }
  0x27   : > { %2911 = vmatprep.subr.bf16.mxu0 %v3235_v16  ;;  %2975 = vmatprep.subr.bf16.mxu1 %v3235_v16  ;;  %v1538_v16 = vld [vmem:[%s4905_s4 + $0x78] sm:$0xff] }
  0x28   : > { %v1610_v48 = vld [vmem:[%s4905_s4 + $0x2b8] sm:$0xff] }
  0x2a   : > { %2912 = vmatpush3.bf16.msra.mxu0 %v3236_v17  ;;  %2976 = vmatpush3.bf16.msra.mxu1 %v3236_v17  ;;  %v1603_v17 = vld [vmem:[%s4905_s4 + $0x280] sm:$0xff] }
  0x2b   : > { %1636 = vmatprep.subr.mxu0 %v1569_v49  ;;  %3025 = vmatprep.subr.mxu1 %v1618_v63  ;;  %v1608_v49 = vld [vmem:[%s4905_s4 + $0x2a8] sm:$0xff] }
  0x2d   : > { %735 = vmatmul.mubr.bf16.vlgmr.msra.gmra.mxu0 %v3237_v18  ;;  %976 = vmatmul.mubr.bf16.vlgmr.msra.gmra.mxu1 %v3240_v19  ;;  %v1536_v18 = vld [vmem:[%s4905_s4 + $0x68] sm:$0xff]  ;;  %v1555_v19 = vld [vmem:[%s4905_s4 + $0x100] sm:$0xff] }
  0x2e   : > { %742 = vmatprep.mubr.bf16.mxu0 %v3243_v20  ;;  %983 = vmatprep.mubr.bf16.mxu1 %v3245_v21  ;;  %v1535_v20 = vld [vmem:[%s4905_s4 + $0x60] sm:$0xff]  ;;  %v1600_v21 = vld [vmem:[%s4905_s4 + $0x268] sm:$0xff] }
  0x2f   : > { %1637 = vmatpush1.msra.mxu0 %v1568_v50  ;;  %3026 = vmatpush3.msra.mxu1 %v1570_v1  ;;  %v1607_v50 = vld [vmem:[%s4905_s4 + $0x2a0] sm:$0xff] }
  0x30   : > { %1638 = vmatprep.subr.mxu0 %v1566_v51  ;;  %3027 = vmatprep.subr.mxu1 %v1615_v2  ;;  %v1605_v51 = vld [vmem:[%s4905_s4 + $0x290] sm:$0xff] }
  0x31   : > { %1639 = vmatpush1.msra.mxu0 %v1565_v52  ;;  %3028 = vmatpush3.msra.mxu1 %v1567_v4  ;;  %v1604_v52 = vld [vmem:[%s4905_s4 + $0x288] sm:$0xff] }
  0x32   : > { %1640 = vmatprep.subr.mxu0 %v1563_v53  ;;  %3029 = vmatprep.subr.mxu1 %v1612_v6  ;;  %v1602_v53 = vld [vmem:[%s4905_s4 + $0x278] sm:$0xff]  ;;  %v1592_v4 = vld [vmem:[%s4905_s4 + $0x228] sm:$0xff] }
  0x33   : > { %1641 = vmatpush1.msra.mxu0 %v1562_v54  ;;  %3030 = vmatpush3.msra.mxu1 %v1564_v7  ;;  %v1601_v54 = vld [vmem:[%s4905_s4 + $0x270] sm:$0xff] }
  0x34   : > { %1642 = vmatprep.subr.mxu0 %v1560_v55  ;;  %3031 = vmatprep.subr.mxu1 %v1609_v9  ;;  %v1590_v9 = vld [vmem:[%s4905_s4 + $0x218] sm:$0xff] }
  0x35   : > { %743 = vmatmul.mubr.bf16.gmra.mxu0 %v3247_v22  ;;  %984 = vmatmul.mubr.bf16.gmra.mxu1 %v3248_v23  ;;  %v1533_v22 = vld [vmem:[%s4905_s4 + $0x50] sm:$0xff]  ;;  %v1552_v23 = vld [vmem:[%s4905_s4 + $0xe8] sm:$0xff] }
  0x36   : > { %750 = vmatprep.mubr.bf16.mxu0 %v3249_v24  ;;  %991 = vmatprep.mubr.bf16.mxu1 %v3251_v25  ;;  %v1532_v24 = vld [vmem:[%s4905_s4 + $0x48] sm:$0xff]  ;;  %v1597_v25 = vld [vmem:[%s4905_s4 + $0x250] sm:$0xff] }
  0x37   : > { %1643 = vmatpush1.msra.mxu0 %v1559_v56  ;;  %3032 = vmatpush3.msra.mxu1 %v1561_v11 }
  0x38   : > { %1644 = vmatprep.subr.mxu0 %v1557_v57  ;;  %3033 = vmatprep.subr.mxu1 %v1606_v13  ;;  %v1599_v57 = vld [vmem:[%s4905_s4 + $0x260] sm:$0xff] }
  0x39   : > { %1645 = vmatpush1.msra.mxu0 %v1556_v58  ;;  %3034 = vmatpush3.msra.mxu1 %v1558_v15  ;;  %v1598_v58 = vld [vmem:[%s4905_s4 + $0x258] sm:$0xff]  ;;  %v1587_v15 = vld [vmem:[%s4905_s4 + $0x200] sm:$0xff] }
  0x3a   : > { %1646 = vmatprep.subr.mxu0 %v1554_v59  ;;  %3035 = vmatprep.subr.mxu1 %v1603_v17 }
  0x3b   : > { %1647 = vmatpush1.msra.mxu0 %v1553_v60  ;;  %3036 = vmatpush3.msra.mxu1 %v1555_v19 }
  0x3c   : > { %1648 = vmatprep.subr.mxu0 %v1551_v61  ;;  %3037 = vmatprep.subr.mxu1 %v1600_v21  ;;  %v1596_v61 = vld [vmem:[%s4905_s4 + $0x248] sm:$0xff] }
  0x3d   : > { %751 = vmatmul.mubr.bf16.gmra.mxu0 %v3253_v26  ;;  %992 = vmatmul.mubr.bf16.gmra.mxu1 %v3254_v27  ;;  %v1530_v26 = vld [vmem:[%s4905_s4 + $0x38] sm:$0xff]  ;;  %v1549_v27 = vld [vmem:[%s4905_s4 + $0xd0] sm:$0xff]  ;;  %v1584_v21 = vld [vmem:[%s4905_s4 + $0x1e8] sm:$0xff] }
  0x3e   : > { %758 = vmatprep.mubr.bf16.mxu0 %v3255_v28  ;;  %999 = vmatprep.mubr.bf16.mxu1 %v3257_v29  ;;  %v1529_v28 = vld [vmem:[%s4905_s4 + $0x30] sm:$0xff]  ;;  %v1594_v29 = vld [vmem:[%s4905_s4 + $0x238] sm:$0xff] }
  0x3f   : > { %1649 = vmatpush1.msra.mxu0 %v1550_v62  ;;  %3038 = vmatpush3.msra.mxu1 %v1552_v23 }
  0x40   : > { %1650 = vmatprep.subr.mxu0 %v1548_v0  ;;  %3039 = vmatprep.subr.mxu1 %v1597_v25  ;;  %v1595_v0 = vld [vmem:[%s4905_s4 + $0x240] sm:$0xff] }
  0x41   : > { %1651 = vmatpush1.msra.mxu0 %v1547_v3  ;;  %3040 = vmatpush3.msra.mxu1 %v1549_v27  ;;  %v1593_v3 = vld [vmem:[%s4905_s4 + $0x230] sm:$0xff] }
  0x42   : > { %1652 = vmatprep.subr.mxu0 %v1545_v5  ;;  %3041 = vmatprep.subr.mxu1 %v1594_v29  ;;  %v1581_v27 = vld [vmem:[%s4905_s4 + $0x1d0] sm:$0xff] }
  0x43   : > { %1653 = vmatpush1.msra.mxu0 %v1544_v8 }
  0x44   : > { %1654 = vmatprep.subr.mxu0 %v1542_v10 }
  0x45   : > { %759 = vmatmul.mubr.bf16.gmra.mxu0 %v3259_v30  ;;  %1000 = vmatmul.mubr.bf16.gmra.mxu1 %v3260_v31  ;;  %v1527_v30 = vld [vmem:[%s4905_s4 + $0x20] sm:$0xff]  ;;  %v1546_v31 = vld [vmem:[%s4905_s4 + $0xb8] sm:$0xff] }
  0x46   : > { %766 = vmatprep.mubr.bf16.mxu0 %v3261_v32  ;;  %1007 = vmatprep.mubr.bf16.mxu1 %v3263_v33  ;;  %v1526_v32 = vld [vmem:[%s4905_s4 + $0x18] sm:$0xff]  ;;  %v1591_v33 = vld [vmem:[%s4905_s4 + $0x220] sm:$0xff] }
  0x47   : > { %1655 = vmatpush1.msra.mxu0 %v1541_v12  ;;  %3042 = vmatpush3.msra.mxu1 %v1546_v31  ;;  %v1589_v12 = vld [vmem:[%s4905_s4 + $0x210] sm:$0xff] }
  0x48   : > { %1656 = vmatprep.subr.mxu0 %v1539_v14  ;;  %3043 = vmatprep.subr.mxu1 %v1591_v33 }
  0x49   : > { %1657 = vmatpush1.msra.mxu0 %v1538_v16  ;;  %v1586_v16 = vld [vmem:[%s4905_s4 + $0x1f8] sm:$0xff] }
  0x4a   : > { %1658 = vmatprep.subr.mxu0 %v1536_v18 }
  0x4b   : > { %1659 = vmatpush1.msra.mxu0 %v1535_v20 }
  0x4c   : > { %1660 = vmatprep.subr.mxu0 %v1533_v22 }
  0x4d   : > { %767 = vmatmul.mubr.bf16.gmra.mxu0 %v3265_v34  ;;  %1008 = vmatmul.mubr.bf16.gmra.mxu1 %v3266_v35  ;;  %v1524_v34 = vld [vmem:[%s4905_s4 + $0x8] sm:$0xff]  ;;  %v1543_v35 = vld [vmem:[%s4905_s4 + $0xa0] sm:$0xff] }
  0x4e   : > { %774 = vmatprep.mubr.bf16.mxu0 %v3267_v36  ;;  %1015 = vmatprep.mubr.bf16.mxu1 %v3269_v37  ;;  %v1523_v36 = vld [vmem:[%s4905_s4] sm:$0xff]  ;;  %v1588_v37 = vld [vmem:[%s4905_s4 + $0x208] sm:$0xff] }
  0x4f   : > { %1661 = vmatpush1.msra.mxu0 %v1532_v24  ;;  %3044 = vmatpush3.msra.mxu1 %v1543_v35  ;;  %v1583_v24 = vld [vmem:[%s4905_s4 + $0x1e0] sm:$0xff] }
  0x50   : > { %1662 = vmatprep.subr.mxu0 %v1530_v26  ;;  %3045 = vmatprep.subr.mxu1 %v1588_v37 }
  0x51   : > { %1663 = vmatpush1.msra.mxu0 %v1529_v28  ;;  %v1580_v28 = vld [vmem:[%s4905_s4 + $0x1c8] sm:$0xff] }
  0x52   : > { %1664 = vmatprep.subr.mxu0 %v1527_v30 }
  0x53   : > { %1665 = vmatpush1.msra.mxu0 %v1526_v32 }
  0x54   : > { %1666 = vmatprep.subr.mxu0 %v1524_v34 }
  0x55   : > { %775 = vmatmul.mubr.bf16.gmra.mxu0 %v3271_v38  ;;  %1016 = vmatmul.mubr.bf16.gmra.mxu1 %v3272_v39  ;;  %v1617_v38 = vld [vmem:[%s4905_s4 + $0x2f0] sm:$0xff]  ;;  %v1540_v39 = vld [vmem:[%s4905_s4 + $0x88] sm:$0xff] }
  0x56   : > { %782 = vmatprep.mubr.bf16.mxu0 %v3273_v40  ;;  %1023 = vmatprep.mubr.bf16.mxu1 %v3275_v41  ;;  %v1616_v40 = vld [vmem:[%s4905_s4 + $0x2e8] sm:$0xff]  ;;  %v1585_v41 = vld [vmem:[%s4905_s4 + $0x1f0] sm:$0xff] }
  0x57   : > { %1667 = vmatpush1.msra.mxu0 %v1523_v36  ;;  %3046 = vmatpush3.msra.mxu1 %v1540_v39 }
  0x58   : > { %1668 = vmatprep.subr.mxu0 %v1617_v38  ;;  %3047 = vmatprep.subr.mxu1 %v1585_v41  ;;  %v1578_v41 = vld [vmem:[%s4905_s4 + $0x1b8] sm:$0xff] }
  0x59   : > { %1669 = vmatpush2.msra.mxu0 %v1616_v40 }
  0x5d   : > { %783 = vmatmul.mubr.bf16.gmra.mxu0 %v3277_v42  ;;  %1024 = vmatmul.mubr.bf16.gmra.mxu1 %v3278_v43  ;;  %v1614_v42 = vld [vmem:[%s4905_s4 + $0x2d8] sm:$0xff]  ;;  %v1537_v43 = vld [vmem:[%s4905_s4 + $0x70] sm:$0xff] }
  0x5e   : > { %790 = vmatprep.mubr.bf16.mxu0 %v3279_v44  ;;  %1031 = vmatprep.mubr.bf16.mxu1 %v3281_v45  ;;  %v1613_v44 = vld [vmem:[%s4905_s4 + $0x2d0] sm:$0xff]  ;;  %v1582_v45 = vld [vmem:[%s4905_s4 + $0x1d8] sm:$0xff] }
  0x5f   : > { %1670 = vmatprep.subr.mxu0 %v1614_v42  ;;  %3048 = vmatpush3.msra.mxu1 %v1537_v43  ;;  %v1577_v42 = vld [vmem:[%s4905_s4 + $0x1b0] sm:$0xff]  ;;  %v1579_v43 = vld [vmem:[%s4905_s4 + $0x1c0] sm:$0xff] }
  0x60   : > { %1671 = vmatpush2.msra.mxu0 %v1613_v44  ;;  %3049 = vmatprep.subr.mxu1 %v1582_v45 }
  0x65   : > { %791 = vmatmul.mubr.bf16.gmra.mxu0 %v3283_v46  ;;  %1032 = vmatmul.mubr.bf16.gmra.mxu1 %v3284_v47  ;;  %v1611_v46 = vld [vmem:[%s4905_s4 + $0x2c0] sm:$0xff]  ;;  %v1534_v47 = vld [vmem:[%s4905_s4 + $0x58] sm:$0xff] }
  0x66   : > { %1672 = vmatprep.subr.mxu0 %v1611_v46  ;;  %3050 = vmatpush3.msra.mxu1 %v1534_v47  ;;  %v1575_v46 = vld [vmem:[%s4905_s4 + $0x1a0] sm:$0xff] }
  0x67   : > { %1673 = vmatpush2.msra.mxu0 %v1610_v48  ;;  %3051 = vmatprep.subr.mxu1 %v1579_v43  ;;  %v1531_v47 = vld [vmem:[%s4905_s4 + $0x40] sm:$0xff]  ;;  %v1574_v48 = vld [vmem:[%s4905_s4 + $0x198] sm:$0xff] }
  0x68   : > { %1674 = vmatprep.subr.mxu0 %v1608_v49  ;;  %3052 = vmatpush3.msra.mxu1 %v1531_v47 }
  0x69   : > { %1675 = vmatpush2.msra.mxu0 %v1607_v50 }
  0x6a   : > { %1676 = vmatprep.subr.mxu0 %v1605_v51 }
  0x6b   : > { %1677 = vmatpush2.msra.mxu0 %v1604_v52  ;;  %v1576_v52 = vld [vmem:[%s4905_s4 + $0x1a8] sm:$0xff] }
  0x6c   : > { %1678 = vmatprep.subr.mxu0 %v1602_v53  ;;  %v1528_v53 = vld [vmem:[%s4905_s4 + $0x28] sm:$0xff]  ;;  %3053 = vmatprep.subr.mxu1 %v1576_v52 }
  0x6d   : > { %1679 = vmatpush2.msra.mxu0 %v1601_v54  ;;  %3054 = vmatpush3.msra.mxu1 %v1528_v53 }
  0x6e   : > { %1680 = vmatprep.subr.mxu0 %v1599_v57 }
  0x6f   : > { %1681 = vmatpush2.msra.mxu0 %v1598_v58 }
  0x70   : > { %1682 = vmatprep.subr.mxu0 %v1596_v61  ;;  %v1571_v61 = vld [vmem:[%s4905_s4 + $0x180] sm:$0xff] }
  0x71   : > { %1683 = vmatpush2.msra.mxu0 %v1595_v0  ;;  %v1573_v0 = vld [vmem:[%s4905_s4 + $0x190] sm:$0xff] }
  0x72   : > { %1684 = vmatprep.subr.mxu0 %v1593_v3  ;;  %v1525_v3 = vld [vmem:[%s4905_s4 + $0x10] sm:$0xff]  ;;  %3055 = vmatprep.subr.mxu1 %v1573_v0 }
  0x73   : > { %1685 = vmatpush2.msra.mxu0 %v1592_v4  ;;  %v2004_v4 = vld [vmem:[%s4906_s5 + $0x170] sm:$0xff]  ;;  %3056 = vmatpush3.msra.mxu1 %v1525_v3 }
  0x74   : > { %1686 = vmatprep.subr.mxu0 %v1590_v9 }
  0x75   : > { %1687 = vmatpush2.msra.mxu0 %v1589_v12 }
  0x76   : > { %1688 = vmatprep.subr.mxu0 %v1587_v15 }
  0x77   : > { %1689 = vmatpush2.msra.mxu0 %v1586_v16 }
  0x78   : > { %1690 = vmatprep.subr.mxu0 %v1584_v21 }
  0x79   : > { %1691 = vmatpush2.msra.mxu0 %v1583_v24 }
  0x7a   : > { %1692 = vmatprep.subr.mxu0 %v1581_v27 }
  0x7b   : > { %1693 = vmatpush2.msra.mxu0 %v1580_v28 }
  0x7c   : > { %1694 = vmatprep.subr.mxu0 %v1578_v41 }
  0x7d   : > { %1695 = vmatpush2.msra.mxu0 %v1577_v42 }
  0x7e   : > { %1696 = vmatprep.subr.mxu0 %v1575_v46 }
  0x7f   : > { %1697 = vmatpush2.msra.mxu0 %v1574_v48 }
  0xed   : > { %v2913_v55 = vpop.f32.mrf.mxu0  ;;  %v2977_v56 = vpop.f32.mrf.mxu1 }
  0xef   : > { %v2914_v59 = vpop.f32.mrf.mxu0  ;;  %v2978_v60 = vpop.f32.mrf.mxu1 }
  0xf0   : > { %v3922_v62 = vadd.f32 %v2914_v59, %v2913_v55  ;;  %v3924_v63 = vadd.f32 %v2978_v60, %v2977_v56  ;;  %v1572_v60 = vld [vmem:[%s4905_s4 + $0x188] sm:$0xff] }
  0xf1   : > { %v2916_v1 = vpop.f32.mrf.mxu0  ;;  %v2980_v2 = vpop.f32.mrf.mxu1  ;;  %1698 = vmatprep.subr.mxu0 %v1572_v60 }
  0xf2   : > { %vm1187_vm0 = vcmp.gt.f32.partialorder %v3924_v63, 0.0  ;;  %vm1107_vm1 = vcmp.gt.f32.partialorder %v3922_v62, 0.0  ;;  %1699 = vmatpush2.msra.mxu0 %v1571_v61 }
  0xf3   : > { %v2917_v5 = vpop.f32.mrf.mxu0  ;;  %v2981_v6 = vpop.f32.mrf.mxu1  ;;  %v1203_v7 = vsel %vm1187_vm0, %v3924_v63, 1.0  ;;  %v1123_v8 = vsel %vm1107_vm1, %v3922_v62, 1.0  ;;  %2023 = vmatprep.subr.mxu0 %v2004_v4 }
  0xf4   : > { %v3946_v10 = vadd.f32 %v2917_v5, %v2916_v1  ;;  %v3948_v11 = vadd.f32 %v2981_v6, %v2980_v2  ;;  %3285 = vrcp.f32 %v1203_v7 }
  0xf5   : > { %v2919_v13 = vpop.f32.mrf.mxu0  ;;  %v2983_v14 = vpop.f32.mrf.mxu1  ;;  %3287 = vrcp.f32 %v1123_v8 }
  0xf6   : > { %vm1188_vm2 = vcmp.gt.f32.partialorder %v3948_v11, 0.0  ;;  %vm1108_vm3 = vcmp.gt.f32.partialorder %v3946_v10, 0.0 }
  0xf7   : > { %v2920_v17 = vpop.f32.mrf.mxu0  ;;  %v2984_v18 = vpop.f32.mrf.mxu1  ;;  %v1204_v19 = vsel %vm1188_vm2, %v3948_v11, 1.0  ;;  %v1124_v20 = vsel %vm1108_vm3, %v3946_v10, 1.0 }
  0xf8   : > { %v3970_v22 = vadd.f32 %v2920_v17, %v2919_v13  ;;  %v3972_v23 = vadd.f32 %v2984_v18, %v2983_v14  ;;  %3289 = vrcp.f32 %v1204_v19 }
  0xf9   : > { %v2922_v25 = vpop.f32.mrf.mxu0  ;;  %v2986_v26 = vpop.f32.mrf.mxu1  ;;  %3291 = vrcp.f32 %v1124_v20 }
  0xfa   : > { %vm1189_vm4 = vcmp.gt.f32.partialorder %v3972_v23, 0.0  ;;  %vm1109_vm5 = vcmp.gt.f32.partialorder %v3970_v22, 0.0 }
  0xfb   : > { %v2923_v29 = vpop.f32.mrf.mxu0  ;;  %v2987_v30 = vpop.f32.mrf.mxu1  ;;  %v1205_v31 = vsel %vm1189_vm4, %v3972_v23, 1.0  ;;  %v1125_v32 = vsel %vm1109_vm5, %v3970_v22, 1.0 }
  0xfc   : > { %v3991_v33 = vadd.f32 %v2923_v29, %v2922_v25  ;;  %v3993_v34 = vadd.f32 %v2987_v30, %v2986_v26  ;;  %3293 = vrcp.f32 %v1205_v31 }
  0xfd   : > { %v2925_v35 = vpop.f32.mrf.mxu0  ;;  %v2989_v36 = vpop.f32.mrf.mxu1  ;;  %3295 = vrcp.f32 %v1125_v32 }
  0xfe   : > { %vm1190_vm6 = vcmp.gt.f32.partialorder %v3993_v34, 0.0  ;;  %vm1110_vm7 = vcmp.gt.f32.partialorder %v3991_v33, 0.0 }
  0xff   : > { %v2926_v37 = vpop.f32.mrf.mxu0  ;;  %v2990_v38 = vpop.f32.mrf.mxu1  ;;  %v1206_v39 = vsel %vm1190_vm6, %v3993_v34, 1.0  ;;  %v1126_v40 = vsel %vm1110_vm7, %v3991_v33, 1.0 }
 0x100   : > { %v4012_v44 = vadd.f32 %v2926_v37, %v2925_v35  ;;  %v4014_v45 = vadd.f32 %v2990_v38, %v2989_v36  ;;  %3297 = vrcp.f32 %v1206_v39 }
 0x101   : > { %v3286_v49 = vpop.eup %3285  ;;  %v2928_v50 = vpop.f32.mrf.mxu0  ;;  %3299 = vrcp.f32 %v1126_v40 }
 0x102   : > { %v2992_v51 = vpop.f32.mrf.mxu1  ;;  %v3288_v54 = vpop.eup %3287  ;;  %v1251_v55 = vsel %vm1187_vm0, %v3286_v49, 0.0  ;;  %vm1191_vm8 = vcmp.gt.f32.partialorder %v4014_v45, 0.0  ;;  %vm1111_vm9 = vcmp.gt.f32.partialorder %v4012_v44, 0.0 }
 0x103   : > { %1381 = vperm.xlu0 %3219, %v1251_v55   ;;  %v2929_v57 = vpop.f32.mrf.mxu0  ;;  %v1207_v58 = vsel %vm1191_vm8, %v4014_v45, 1.0  ;;  %v1127_v59 = vsel %vm1111_vm9, %v4012_v44, 1.0  ;;  %v1171_v8 = vsel %vm1107_vm1, %v3288_v54, 0.0 }
 0x104   : > { %v2993_v56 = vpop.f32.mrf.mxu1  ;;  %v4052_v2 = vadd.f32 %v2929_v57, %v2928_v50  ;;  %3301 = vrcp.f32 %v1207_v58 }
 0x105   : > { %v4050_v1 = vadd.f32 %v2993_v56, %v2992_v51  ;;  %v3290_v5 = vpop.eup %3289  ;;  %v2931_v6 = vpop.f32.mrf.mxu0  ;;  %3303 = vrcp.f32 %v1127_v59 }
 0x106   : > { %v2995_v7 = vpop.f32.mrf.mxu1  ;;  %v3292_v9 = vpop.eup %3291  ;;  %v1252_v12 = vsel %vm1188_vm2, %v3290_v5, 0.0  ;;  %vm1112_vm11 = vcmp.gt.f32.partialorder %v4052_v2, 0.0 }
 0x107   : > { %vm1192_vm10 = vcmp.gt.f32.partialorder %v4050_v1, 0.0  ;;  %1386 = vperm.xlu1 %3220, %v1252_v12   ;;  %v2932_v14 = vpop.f32.mrf.mxu0  ;;  %1269 = vperm.xlu0 %3219, %v1171_v8   ;;  %v1128_v16 = vsel %vm1112_vm11, %v4052_v2, 1.0  ;;  %v1172_v24 = vsel %vm1108_vm3, %v3292_v9, 0.0 }
 0x108   : > { %v2996_v13 = vpop.f32.mrf.mxu1  ;;  %v1208_v15 = vsel %vm1192_vm10, %v4050_v1, 1.0  ;;  %v4074_v18 = vadd.f32 %v2932_v14, %v2931_v6 }
 0x109   : > { %v4072_v17 = vadd.f32 %v2996_v13, %v2995_v7  ;;  %3305 = vrcp.f32 %v1208_v15  ;;  %v3294_v19 = vpop.eup %3293  ;;  %v2934_v20 = vpop.f32.mrf.mxu0 }
 0x10a   : > { %v2998_v21 = vpop.f32.mrf.mxu1  ;;  %v3296_v25 = vpop.eup %3295  ;;  %v1253_v26 = vsel %vm1189_vm4, %v3294_v19, 0.0  ;;  %3307 = vrcp.f32 %v1128_v16  ;;  %vm1113_vm13 = vcmp.gt.f32.partialorder %v4074_v18, 0.0 }
 0x10b   : > { %vm1193_vm12 = vcmp.gt.f32.partialorder %v4072_v17, 0.0  ;;  %v2935_v27 = vpop.f32.mrf.mxu0  ;;  %1274 = vperm.xlu1 %3220, %v1172_v24   ;;  %1391 = vperm.xlu0 %3219, %v1253_v26   ;;  %v1129_v30 = vsel %vm1113_vm13, %v4074_v18, 1.0  ;;  %v1173_v38 = vsel %vm1109_vm5, %v3296_v25, 0.0 }
 0x10c   : > { %v2999_v28 = vpop.f32.mrf.mxu1  ;;  %v1209_v29 = vsel %vm1193_vm12, %v4072_v17, 1.0  ;;  %v4088_v31 = vadd.f32 %v2935_v27, %v2934_v20 }
 0x10d   : > { %v4090_v32 = vadd.f32 %v2999_v28, %v2998_v21  ;;  %3309 = vrcp.f32 %v1209_v29  ;;  %v3298_v35 = vpop.eup %3297  ;;  %v2937_v36 = vpop.f32.mrf.mxu0 }
 0x10e   : > { %v3001_v37 = vpop.f32.mrf.mxu1  ;;  %v1254_v39 = vsel %vm1190_vm6, %v3298_v35, 0.0  ;;  %3311 = vrcp.f32 %v1129_v30  ;;  %vm1114_vm15 = vcmp.gt.f32.partialorder %v4088_v31, 0.0  ;;  %v3300_v40 = vpop.eup %3299 }
 0x10f   : > { %vm1194_vm14 = vcmp.gt.f32.partialorder %v4090_v32, 0.0  ;;  %v2938_v41 = vpop.f32.mrf.mxu0  ;;  %1279 = vperm.xlu1 %3220, %v1173_v38   ;;  %1396 = vperm.xlu0 %3219, %v1254_v39   ;;  %v1130_v46 = vsel %vm1114_vm15, %v4088_v31, 1.0  ;;  %v1174_v52 = vsel %vm1110_vm7, %v3300_v40, 0.0 }
 0x110   : > { %v3002_v42 = vpop.f32.mrf.mxu1  ;;  %v1210_v43 = vsel %vm1194_vm14, %v4090_v32, 1.0  ;;  %v4104_v47 = vadd.f32 %v2938_v41, %v2937_v36 }
 0x111   : > { %v4106_v48 = vadd.f32 %v3002_v42, %v3001_v37  ;;  %3313 = vrcp.f32 %v1210_v43  ;;  %v3302_v49 = vpop.eup %3301  ;;  %v2940_v50 = vpop.f32.mrf.mxu0 }
 0x112   : > { %v3004_v51 = vpop.f32.mrf.mxu1  ;;  %3315 = vrcp.f32 %v1130_v46  ;;  %v1255_v53 = vsel %vm1191_vm8, %v3302_v49, 0.0  ;;  %vm1115_vm1 = vcmp.gt.f32.partialorder %v4104_v47, 0.0  ;;  %v3304_v54 = vpop.eup %3303 }
 0x113   : > { %vm1195_vm0 = vcmp.gt.f32.partialorder %v4106_v48, 0.0  ;;  %v2941_v55 = vpop.f32.mrf.mxu0  ;;  %1284 = vperm.xlu1 %3220, %v1174_v52   ;;  %1401 = vperm.xlu0 %3219, %v1255_v53   ;;  %v1131_v58 = vsel %vm1115_vm1, %v4104_v47, 1.0  ;;  %v1175_v4 = vsel %vm1111_vm9, %v3304_v54, 0.0 }
 0x114   : > { %v3005_v56 = vpop.f32.mrf.mxu1  ;;  %v1211_v57 = vsel %vm1195_vm0, %v4106_v48, 1.0  ;;  %v4120_v59 = vadd.f32 %v2941_v55, %v2940_v50 }
 0x115   : > { %v4122_v60 = vadd.f32 %v3005_v56, %v3004_v51  ;;  %3317 = vrcp.f32 %v1211_v57  ;;  %v2943_v0 = vpop.f32.mrf.mxu0 }
 0x116   : > { %v3306_v61 = vpop.eup %3305  ;;  %v3007_v3 = vpop.f32.mrf.mxu1  ;;  %3319 = vrcp.f32 %v1131_v58  ;;  %vm1116_vm3 = vcmp.gt.f32.partialorder %v4120_v59, 0.0 }
 0x117   : > { %v1256_v5 = vsel %vm1192_vm10, %v3306_v61, 0.0  ;;  %vm1196_vm2 = vcmp.gt.f32.partialorder %v4122_v60, 0.0  ;;  %v3308_v6 = vpop.eup %3307  ;;  %v2944_v7 = vpop.f32.mrf.mxu0  ;;  %1289 = vperm.xlu1 %3220, %v1175_v4   ;;  %v1132_v12 = vsel %vm1116_vm3, %v4120_v59, 1.0 }
 0x118   : > { %v3008_v8 = vpop.f32.mrf.mxu1  ;;  %1406 = vperm.xlu0 %3219, %v1256_v5   ;;  %v1212_v9 = vsel %vm1196_vm2, %v4122_v60, 1.0  ;;  %v4136_v13 = vadd.f32 %v2944_v7, %v2943_v0  ;;  %v1176_v20 = vsel %vm1112_vm11, %v3308_v6, 0.0 }
 0x119   : > { %v4138_v14 = vadd.f32 %v3008_v8, %v3007_v3  ;;  %3321 = vrcp.f32 %v1212_v9  ;;  %v2946_v16 = vpop.f32.mrf.mxu0 }
 0x11a   : > { %v3310_v15 = vpop.eup %3309  ;;  %v3010_v19 = vpop.f32.mrf.mxu1  ;;  %3323 = vrcp.f32 %v1132_v12  ;;  %vm1117_vm5 = vcmp.gt.f32.partialorder %v4136_v13, 0.0 }
 0x11b   : > { %v1257_v21 = vsel %vm1193_vm12, %v3310_v15, 0.0  ;;  %vm1197_vm4 = vcmp.gt.f32.partialorder %v4138_v14, 0.0  ;;  %v3312_v24 = vpop.eup %3311  ;;  %v2947_v25 = vpop.f32.mrf.mxu0  ;;  %1294 = vperm.xlu1 %3220, %v1176_v20   ;;  %v1133_v28 = vsel %vm1117_vm5, %v4136_v13, 1.0 }
 0x11c   : > { %v3011_v26 = vpop.f32.mrf.mxu1  ;;  %1411 = vperm.xlu0 %3219, %v1257_v21   ;;  %v1213_v27 = vsel %vm1197_vm4, %v4138_v14, 1.0  ;;  %v4152_v29 = vadd.f32 %v2947_v25, %v2946_v16  ;;  %v1177_v39 = vsel %vm1113_vm13, %v3312_v24, 0.0 }
 0x11d   : > { %v4154_v30 = vadd.f32 %v3011_v26, %v3010_v19  ;;  %3325 = vrcp.f32 %v1213_v27  ;;  %v2949_v36 = vpop.f32.mrf.mxu0 }
 0x11e   : > { %v3314_v35 = vpop.eup %3313  ;;  %v3013_v37 = vpop.f32.mrf.mxu1  ;;  %3327 = vrcp.f32 %v1133_v28  ;;  %vm1118_vm7 = vcmp.gt.f32.partialorder %v4152_v29, 0.0 }
 0x11f   : > { %v3316_v38 = vpop.eup %3315  ;;  %v1258_v40 = vsel %vm1194_vm14, %v3314_v35, 0.0  ;;  %vm1198_vm6 = vcmp.gt.f32.partialorder %v4154_v30, 0.0  ;;  %v2950_v41 = vpop.f32.mrf.mxu0  ;;  %1299 = vperm.xlu1 %3220, %v1177_v39   ;;  %v1134_v46 = vsel %vm1118_vm7, %v4152_v29, 1.0 }
 0x120   : > { %v3014_v42 = vpop.f32.mrf.mxu1  ;;  %1416 = vperm.xlu0 %3219, %v1258_v40   ;;  %v1214_v43 = vsel %vm1198_vm6, %v4154_v30, 1.0  ;;  %v4168_v49 = vadd.f32 %v2950_v41, %v2949_v36  ;;  %v1178_v54 = vsel %vm1114_vm15, %v3316_v38, 0.0 }
 0x121   : > { %v4170_v50 = vadd.f32 %v3014_v42, %v3013_v37  ;;  %3329 = vrcp.f32 %v1214_v43  ;;  %v2952_v52 = vpop.f32.mrf.mxu0 }
 0x122   : > { %v3318_v51 = vpop.eup %3317  ;;  %v3016_v53 = vpop.f32.mrf.mxu1  ;;  %3331 = vrcp.f32 %v1134_v46  ;;  %vm1119_vm9 = vcmp.gt.f32.partialorder %v4168_v49, 0.0 }
 0x123   : > { %v3320_v55 = vpop.eup %3319  ;;  %v1259_v56 = vsel %vm1195_vm0, %v3318_v51, 0.0  ;;  %vm1199_vm8 = vcmp.gt.f32.partialorder %v4170_v50, 0.0  ;;  %v2953_v57 = vpop.f32.mrf.mxu0  ;;  %1304 = vperm.xlu1 %3220, %v1178_v54   ;;  %v1135_v0 = vsel %vm1119_vm9, %v4168_v49, 1.0 }
 0x124   : > { %v3017_v58 = vpop.f32.mrf.mxu1  ;;  %1421 = vperm.xlu0 %3219, %v1259_v56   ;;  %v1215_v61 = vsel %vm1199_vm8, %v4170_v50, 1.0  ;;  %v4184_v3 = vadd.f32 %v2953_v57, %v2952_v52  ;;  %v1179_v8 = vsel %vm1115_vm1, %v3320_v55, 0.0 }
 0x125   : > { %v4186_v4 = vadd.f32 %v3017_v58, %v3016_v53  ;;  %3333 = vrcp.f32 %v1215_v61  ;;  %v2955_v6 = vpop.f32.mrf.mxu0 }
 0x126   : > { %v3322_v5 = vpop.eup %3321  ;;  %v3019_v7 = vpop.f32.mrf.mxu1  ;;  %3335 = vrcp.f32 %v1135_v0  ;;  %vm1120_vm11 = vcmp.gt.f32.partialorder %v4184_v3, 0.0 }
 0x127   : > { %v3324_v9 = vpop.eup %3323  ;;  %v1260_v12 = vsel %vm1196_vm2, %v3322_v5, 0.0  ;;  %vm1200_vm10 = vcmp.gt.f32.partialorder %v4186_v4, 0.0  ;;  %v2956_v15 = vpop.f32.mrf.mxu0  ;;  %1309 = vperm.xlu1 %3220, %v1179_v8   ;;  %v1136_v20 = vsel %vm1120_vm11, %v4184_v3, 1.0 }
 0x128   : > { %v3020_v16 = vpop.f32.mrf.mxu1  ;;  %1426 = vperm.xlu0 %3219, %v1260_v12   ;;  %v1216_v19 = vsel %vm1200_vm10, %v4186_v4, 1.0  ;;  %v4200_v21 = vadd.f32 %v2956_v15, %v2955_v6  ;;  %v1180_v28 = vsel %vm1116_vm3, %v3324_v9, 0.0 }
 0x129   : > { %v4202_v24 = vadd.f32 %v3020_v16, %v3019_v7  ;;  %3337 = vrcp.f32 %v1216_v19  ;;  %v2958_v26 = vpop.f32.mrf.mxu0 }
 0x12a   : > { %v3326_v25 = vpop.eup %3325  ;;  %v3022_v27 = vpop.f32.mrf.mxu1  ;;  %3339 = vrcp.f32 %v1136_v20  ;;  %vm1121_vm13 = vcmp.gt.f32.partialorder %v4200_v21, 0.0 }
 0x12b   : > { %v3328_v35 = vpop.eup %3327  ;;  %v1261_v36 = vsel %vm1197_vm4, %v3326_v25, 0.0  ;;  %vm1201_vm12 = vcmp.gt.f32.partialorder %v4202_v24, 0.0  ;;  %v2959_v37 = vpop.f32.mrf.mxu0  ;;  %1314 = vperm.xlu1 %3220, %v1180_v28   ;;  %v1137_v40 = vsel %vm1121_vm13, %v4200_v21, 1.0 }
 0x12c   : > { %v3023_v38 = vpop.f32.mrf.mxu1  ;;  %1431 = vperm.xlu0 %3219, %v1261_v36   ;;  %v1217_v39 = vsel %vm1201_vm12, %v4202_v24, 1.0  ;;  %v4216_v41 = vadd.f32 %v2959_v37, %v2958_v26  ;;  %v1181_v46 = vsel %vm1117_vm5, %v3328_v35, 0.0  ;;  %v2005_v26 = vld [vmem:[%s4906_s5 + $0x178] sm:$0xff] }
 0x12d   : > { %v4218_v42 = vadd.f32 %v3023_v38, %v3022_v27  ;;  %3341 = vrcp.f32 %v1217_v39  ;;  %3137 = vmatprep.subr.mxu1 %v2005_v26  ;;  %v2003_v39 = vld [vmem:[%s4906_s5 + $0x168] sm:$0xff] }
 0x12e   : > { %v3330_v43 = vpop.eup %3329  ;;  %3343 = vrcp.f32 %v1137_v40  ;;  %vm1122_vm15 = vcmp.gt.f32.partialorder %v4216_v41, 0.0  ;;  %v2001_v40 = vld [vmem:[%s4906_s5 + $0x158] sm:$0xff] }
 0x12f   : > { %v1262_v51 = vsel %vm1198_vm6, %v3330_v43, 0.0  ;;  %vm1202_vm14 = vcmp.gt.f32.partialorder %v4218_v42, 0.0  ;;  %v3332_v52 = vpop.eup %3331  ;;  %1319 = vperm.xlu1 %3220, %v1181_v46   ;;  %v1138_v54 = vsel %vm1122_vm15, %v4216_v41, 1.0 }
 0x130   : > { %1436 = vperm.xlu0 %3219, %v1262_v51   ;;  %v1218_v53 = vsel %vm1202_vm14, %v4218_v42, 1.0  ;;  %v1182_v56 = vsel %vm1118_vm7, %v3332_v52, 0.0  ;;  %v1998_v51 = vld [vmem:[%s4906_s5 + $0x140] sm:$0xff] }
 0x131   : > { %3345 = vrcp.f32 %v1218_v53  ;;  %v2002_v52 = vld [vmem:[%s4906_s5 + $0x160] sm:$0xff] }
 0x132   : > { %v3334_v55 = vpop.eup %3333  ;;  %3347 = vrcp.f32 %v1138_v54 }
 0x133   : > { %v1263_v57 = vsel %vm1199_vm8, %v3334_v55, 0.0  ;;  %v3336_v58 = vpop.eup %3335  ;;  %1324 = vperm.xlu1 %3220, %v1182_v56   ;;  %v1995_v56 = vld [vmem:[%s4906_s5 + $0x128] sm:$0xff] }
 0x134   : > { %1441 = vperm.xlu0 %3219, %v1263_v57   ;;  %v1183_v0 = vsel %vm1119_vm9, %v3336_v58, 0.0  ;;  %v1999_v57 = vld [vmem:[%s4906_s5 + $0x148] sm:$0xff] }
 0x136   : > { %v3338_v61 = vpop.eup %3337 }
 0x137   : > { %v1264_v5 = vsel %vm1200_vm10, %v3338_v61, 0.0  ;;  %v3340_v6 = vpop.eup %3339  ;;  %1329 = vperm.xlu1 %3220, %v1183_v0  }
 0x138   : > { %1446 = vperm.xlu0 %3219, %v1264_v5   ;;  %v1184_v8 = vsel %vm1120_vm11, %v3340_v6, 0.0  ;;  %v1992_v5 = vld [vmem:[%s4906_s5 + $0x110] sm:$0xff] }
 0x139   : > { %v1996_v6 = vld [vmem:[%s4906_s5 + $0x130] sm:$0xff] }
 0x13a   : > { %v3342_v7 = vpop.eup %3341 }
 0x13b   : > { %v1265_v9 = vsel %vm1201_vm12, %v3342_v7, 0.0  ;;  %v3344_v12 = vpop.eup %3343  ;;  %1334 = vperm.xlu1 %3220, %v1184_v8  }
 0x13c   : > { %1451 = vperm.xlu0 %3219, %v1265_v9   ;;  %v1185_v16 = vsel %vm1121_vm13, %v3344_v12, 0.0  ;;  %v1989_v12 = vld [vmem:[%s4906_s5 + $0xf8] sm:$0xff] }
 0x13e   : > { %v3346_v15 = vpop.eup %3345 }
 0x13f   : > { %v1266_v19 = vsel %vm1202_vm14, %v3346_v15, 0.0  ;;  %v3348_v20 = vpop.eup %3347  ;;  %1339 = vperm.xlu1 %3220, %v1185_v16   ;;  %v1993_v15 = vld [vmem:[%s4906_s5 + $0x118] sm:$0xff] }
 0x140   : > { %1456 = vperm.xlu0 %3219, %v1266_v19   ;;  %v1186_v25 = vsel %vm1122_vm15, %v3348_v20, 0.0 }
 0x143   : > { %1344 = vperm.xlu1 %3220, %v1186_v25   ;;  %v1986_v25 = vld [vmem:[%s4906_s5 + $0xe0] sm:$0xff] }
 0x17e   : > { %v1382_v27 = vpop.permute.xlu0 %1381 }
 0x17f   : > { %v1459_v28 = vmul.f32 %v3924_v63, %v1382_v27  ;;  %v2000_v63 = vld [vmem:[%s4906_s5 + $0x150] sm:$0xff] }
 0x181   : > { %1700 = vmatprep.mubr.f32.mxu0 %v1459_v28  ;;  %1861 = vmatprep.mubr.f32.mxu1 %v1459_v28 }
 0x182   : > { %v1387_v35 = vpop.permute.xlu1 %1386  ;;  %v1270_v36 = vpop.permute.xlu0 %1269 }
 0x183   : > { %v1460_v37 = vmul.f32 %v3948_v11, %v1387_v35  ;;  %v1347_v38 = vmul.f32 %v3922_v62, %v1270_v36  ;;  %v1983_v36 = vld [vmem:[%s4906_s5 + $0xc8] sm:$0xff] }
 0x185   : > { %1701 = vmatmul.mubr.f32.vlgmr.msra.gmra.mxu0 %v1347_v38  ;;  %1862 = vmatmul.mubr.f32.vlgmr.msra.gmra.mxu1 %v1347_v38 }
 0x186   : > { %2024 = vmatpush1.msra.mxu0 %v2003_v39  ;;  %v1275_v43 = vpop.permute.xlu1 %1274  ;;  %1706 = vmatprep.mubr.f32.mxu0 %v1460_v37  ;;  %v1392_v11 = vpop.permute.xlu0 %1391 }
 0x187   : > { %v1348_v62 = vmul.f32 %v3946_v10, %v1275_v43  ;;  %1866 = vmatprep.mubr.f32.mxu1 %v1460_v37  ;;  %v1461_v46 = vmul.f32 %v3972_v23, %v1392_v11  ;;  %2025 = vmatprep.subr.mxu0 %v2001_v40  ;;  %v1997_v10 = vld [vmem:[%s4906_s5 + $0x138] sm:$0xff]  ;;  %v1987_v37 = vld [vmem:[%s4906_s5 + $0xe8] sm:$0xff]  ;;  %v1984_v43 = vld [vmem:[%s4906_s5 + $0xd0] sm:$0xff] }
 0x188   : > { %2026 = vmatpush1.msra.mxu0 %v2000_v63  ;;  %3138 = vmatpush3.msra.mxu1 %v2005_v26  ;;  %v1990_v26 = vld [vmem:[%s4906_s5 + $0x100] sm:$0xff]  ;;  %v1980_v63 = vld [vmem:[%s4906_s5 + $0xb0] sm:$0xff] }
 0x189   : > { %1707 = vmatmul.mubr.f32.gmra.mxu0 %v1348_v62  ;;  %1867 = vmatmul.mubr.f32.gmra.mxu1 %v1348_v62 }
 0x18a   : > { %v1280_v53 = vpop.permute.xlu1 %1279  ;;  %1712 = vmatprep.mubr.f32.mxu0 %v1461_v46  ;;  %1871 = vmatprep.mubr.f32.mxu1 %v1461_v46  ;;  %v1397_v23 = vpop.permute.xlu0 %1396 }
 0x18b   : > { %v1349_v54 = vmul.f32 %v3970_v22, %v1280_v53  ;;  %v1462_v55 = vmul.f32 %v3993_v34, %v1397_v23  ;;  %2027 = vmatprep.subr.mxu0 %v1998_v51  ;;  %3139 = vmatprep.subr.mxu1 %v2002_v52  ;;  %v1994_v22 = vld [vmem:[%s4906_s5 + $0x120] sm:$0xff]  ;;  %v1977_v51 = vld [vmem:[%s4906_s5 + $0x98] sm:$0xff] }
 0x18c   : > { %2028 = vmatpush1.msra.mxu0 %v1997_v10  ;;  %3140 = vmatpush3.msra.mxu1 %v2002_v52  ;;  %v1981_v52 = vld [vmem:[%s4906_s5 + $0xb8] sm:$0xff] }
 0x18d   : > { %1713 = vmatmul.mubr.f32.gmra.mxu0 %v1349_v54  ;;  %1872 = vmatmul.mubr.f32.gmra.mxu1 %v1349_v54  ;;  %v1974_v54 = vld [vmem:[%s4906_s5 + $0x80] sm:$0xff] }
 0x18e   : > { %v1285_v58 = vpop.permute.xlu1 %1284  ;;  %1718 = vmatprep.mubr.f32.mxu0 %v1462_v55  ;;  %1876 = vmatprep.mubr.f32.mxu1 %v1462_v55  ;;  %v1402_v34 = vpop.permute.xlu0 %1401  ;;  %v1978_v55 = vld [vmem:[%s4906_s5 + $0xa0] sm:$0xff] }
 0x18f   : > { %v1350_v61 = vmul.f32 %v3991_v33, %v1285_v58  ;;  %v1463_v0 = vmul.f32 %v4014_v45, %v1402_v34  ;;  %2029 = vmatprep.subr.mxu0 %v1995_v56  ;;  %3141 = vmatprep.subr.mxu1 %v1999_v57  ;;  %v1991_v33 = vld [vmem:[%s4906_s5 + $0x108] sm:$0xff] }
 0x190   : > { %2030 = vmatpush1.msra.mxu0 %v1994_v22  ;;  %3142 = vmatpush3.msra.mxu1 %v1999_v57  ;;  %v1971_v58 = vld [vmem:[%s4906_s5 + $0x68] sm:$0xff] }
 0x191   : > { %1719 = vmatmul.mubr.f32.gmra.mxu0 %v1350_v61  ;;  %1877 = vmatmul.mubr.f32.gmra.mxu1 %v1350_v61  ;;  %v1975_v34 = vld [vmem:[%s4906_s5 + $0x88] sm:$0xff] }
 0x192   : > { %v1290_v7 = vpop.permute.xlu1 %1289  ;;  %1724 = vmatprep.mubr.f32.mxu0 %v1463_v0  ;;  %1881 = vmatprep.mubr.f32.mxu1 %v1463_v0 }
 0x193   : > { %v1407_v45 = vpop.permute.xlu0 %1406  ;;  %v1351_v8 = vmul.f32 %v4012_v44, %v1290_v7  ;;  %2031 = vmatprep.subr.mxu0 %v1992_v5  ;;  %3143 = vmatprep.subr.mxu1 %v1996_v6  ;;  %v1988_v44 = vld [vmem:[%s4906_s5 + $0xf0] sm:$0xff] }
 0x194   : > { %v1464_v9 = vmul.f32 %v4050_v1, %v1407_v45  ;;  %2032 = vmatpush1.msra.mxu0 %v1991_v33  ;;  %3144 = vmatpush3.msra.mxu1 %v1996_v6  ;;  %v1968_v6 = vld [vmem:[%s4906_s5 + $0x50] sm:$0xff] }
 0x195   : > { %1725 = vmatmul.mubr.f32.gmra.mxu0 %v1351_v8  ;;  %1882 = vmatmul.mubr.f32.gmra.mxu1 %v1351_v8  ;;  %v1972_v33 = vld [vmem:[%s4906_s5 + $0x70] sm:$0xff] }
 0x196   : > { %v1295_v16 = vpop.permute.xlu1 %1294  ;;  %1730 = vmatprep.mubr.f32.mxu0 %v1464_v9  ;;  %1886 = vmatprep.mubr.f32.mxu1 %v1464_v9  ;;  %v1965_v9 = vld [vmem:[%s4906_s5 + $0x38] sm:$0xff] }
 0x197   : > { %v1412_v1 = vpop.permute.xlu0 %1411  ;;  %v1352_v19 = vmul.f32 %v4052_v2, %v1295_v16  ;;  %2033 = vmatprep.subr.mxu0 %v1989_v12  ;;  %3145 = vmatprep.subr.mxu1 %v1993_v15  ;;  %v1985_v2 = vld [vmem:[%s4906_s5 + $0xd8] sm:$0xff] }
 0x198   : > { %v1465_v20 = vmul.f32 %v4072_v17, %v1412_v1  ;;  %2034 = vmatpush1.msra.mxu0 %v1988_v44  ;;  %3146 = vmatpush3.msra.mxu1 %v1993_v15  ;;  %v1969_v12 = vld [vmem:[%s4906_s5 + $0x58] sm:$0xff]  ;;  %v1962_v1 = vld [vmem:[%s4906_s5 + $0x20] sm:$0xff] }
 0x199   : > { %1731 = vmatmul.mubr.f32.gmra.mxu0 %v1352_v19  ;;  %1887 = vmatmul.mubr.f32.gmra.mxu1 %v1352_v19  ;;  %v1966_v19 = vld [vmem:[%s4906_s5 + $0x40] sm:$0xff] }
 0x19a   : > { %v1300_v27 = vpop.permute.xlu1 %1299  ;;  %1736 = vmatprep.mubr.f32.mxu0 %v1465_v20  ;;  %1891 = vmatprep.mubr.f32.mxu1 %v1465_v20 }
 0x19b   : > { %v1417_v17 = vpop.permute.xlu0 %1416  ;;  %v1353_v28 = vmul.f32 %v4074_v18, %v1300_v27  ;;  %2035 = vmatprep.subr.mxu0 %v1986_v25  ;;  %3147 = vmatprep.subr.mxu1 %v1990_v26  ;;  %v1982_v18 = vld [vmem:[%s4906_s5 + $0xc0] sm:$0xff]  ;;  %v1963_v27 = vld [vmem:[%s4906_s5 + $0x28] sm:$0xff] }
 0x19c   : > { %v1466_v35 = vmul.f32 %v4090_v32, %v1417_v17  ;;  %2036 = vmatpush1.msra.mxu0 %v1985_v2  ;;  %3148 = vmatpush3.msra.mxu1 %v1990_v26  ;;  %v1959_v2 = vld [vmem:[%s4906_s5 + $0x8] sm:$0xff] }
 0x19d   : > { %1737 = vmatmul.mubr.f32.gmra.mxu0 %v1353_v28  ;;  %1892 = vmatmul.mubr.f32.gmra.mxu1 %v1353_v28  ;;  %v1960_v28 = vld [vmem:[%s4906_s5 + $0x10] sm:$0xff] }
 0x19e   : > { %v1305_v38 = vpop.permute.xlu1 %1304  ;;  %1742 = vmatprep.mubr.f32.mxu0 %v1466_v35  ;;  %1896 = vmatprep.mubr.f32.mxu1 %v1466_v35  ;;  %v4431_v35 = vld [vmem:[%s4424_s14] sm:$0xff] }
 0x19f   : > { %v1422_v32 = vpop.permute.xlu0 %1421  ;;  %v1354_v39 = vmul.f32 %v4088_v31, %v1305_v38  ;;  %2037 = vmatprep.subr.mxu0 %v1983_v36  ;;  %3149 = vmatprep.subr.mxu1 %v1987_v37  ;;  %v1979_v31 = vld [vmem:[%s4906_s5 + $0xa8] sm:$0xff]  ;;  %4915 = vst [vmem:[#allocation3_spill] sm:$0xff] %v4431_v35  ;;  %v1946_v38 = vld [vmem:[%s4424_s14 + $0x20] sm:$0xff] }
 0x1a0   : > { %v1467_v40 = vmul.f32 %v4106_v48, %v1422_v32  ;;  %2038 = vmatpush1.msra.mxu0 %v1982_v18  ;;  %3150 = vmatpush3.msra.mxu1 %v1987_v37  ;;  %v4435_v36 = vld [vmem:[%s4424_s14 + $0x8] sm:$0xff]  ;;  %v4439_v37 = vld [vmem:[%s4424_s14 + $0x10] sm:$0xff]  ;;  %v4445_v18 = vld [vmem:[%s4424_s14 + $0x18] sm:$0xff] }
 0x1a1   : > { %1743 = vmatmul.mubr.f32.gmra.mxu0 %v1354_v39  ;;  %1897 = vmatmul.mubr.f32.gmra.mxu1 %v1354_v39  ;;  %4916 = vst [vmem:[#allocation4_spill] sm:$0xff] %v4439_v37  ;;  %4917 = vst [vmem:[#allocation5_spill] sm:$0xff] %v4445_v18  ;;  %v4452_v32 = vld [vmem:[%s4424_s14 + $0x28] sm:$0xff]  ;;  %v1948_v39 = vld [vmem:[%s4424_s14 + $0x30] sm:$0xff] }
 0x1a2   : > { %v1310_v11 = vpop.permute.xlu1 %1309  ;;  %1748 = vmatprep.mubr.f32.mxu0 %v1467_v40  ;;  %1901 = vmatprep.mubr.f32.mxu1 %v1467_v40  ;;  %4918 = vst [vmem:[#allocation6_spill] sm:$0xff] %v4452_v32  ;;  %v1949_v40 = vld [vmem:[%s4424_s14 + $0x38] sm:$0xff] }
 0x1a3   : > { %v1427_v48 = vpop.permute.xlu0 %1426  ;;  %v1355_v62 = vmul.f32 %v4104_v47, %v1310_v11  ;;  %2039 = vmatprep.subr.mxu0 %v1980_v63  ;;  %3151 = vmatprep.subr.mxu1 %v1984_v43  ;;  %v1976_v47 = vld [vmem:[%s4906_s5 + $0x90] sm:$0xff]  ;;  %v1950_v63 = vld [vmem:[%s4424_s14 + $0x40] sm:$0xff]  ;;  %v1953_v11 = vld [vmem:[%s4424_s14 + $0x58] sm:$0xff] }
 0x1a4   : > { %v1468_v46 = vmul.f32 %v4122_v60, %v1427_v48  ;;  %2040 = vmatpush1.msra.mxu0 %v1979_v31  ;;  %3152 = vmatpush3.msra.mxu1 %v1984_v43  ;;  %v1951_v43 = vld [vmem:[%s4424_s14 + $0x48] sm:$0xff]  ;;  %v1952_v31 = vld [vmem:[%s4424_s14 + $0x50] sm:$0xff]  ;;  %v1954_v48 = vld [vmem:[%s4424_s14 + $0x60] sm:$0xff] }
 0x1a5   : > { %1749 = vmatmul.mubr.f32.gmra.mxu0 %v1355_v62  ;;  %1902 = vmatmul.mubr.f32.gmra.mxu1 %v1355_v62  ;;  %v1955_v62 = vld [vmem:[%s4424_s14 + $0x68] sm:$0xff] }
 0x1a6   : > { %v1315_v10 = vpop.permute.xlu1 %1314  ;;  %1754 = vmatprep.mubr.f32.mxu0 %v1468_v46  ;;  %1906 = vmatprep.mubr.f32.mxu1 %v1468_v46  ;;  %v1956_v46 = vld [vmem:[%s4424_s14 + $0x70] sm:$0xff] }
 0x1a7   : > { %v1432_v60 = vpop.permute.xlu0 %1431  ;;  %v1356_v53 = vmul.f32 %v4120_v59, %v1315_v10  ;;  %2041 = vmatprep.subr.mxu0 %v1977_v51  ;;  %3153 = vmatprep.subr.mxu1 %v1981_v52  ;;  %v1973_v59 = vld [vmem:[%s4906_s5 + $0x78] sm:$0xff] }
 0x1a8   : > { %v1469_v23 = vmul.f32 %v4138_v14, %v1432_v60  ;;  %2042 = vmatpush1.msra.mxu0 %v1976_v47  ;;  %3154 = vmatpush3.msra.mxu1 %v1981_v52  ;;  %v1957_v51 = vld [vmem:[%s4424_s14 + $0x78] sm:$0xff] }
 0x1a9   : > { %1755 = vmatmul.mubr.f32.gmra.mxu0 %v1356_v53  ;;  %1907 = vmatmul.mubr.f32.gmra.mxu1 %v1356_v53 }
 0x1aa   : > { %v1320_v56 = vpop.permute.xlu1 %1319  ;;  %1760 = vmatprep.mubr.f32.mxu0 %v1469_v23  ;;  %1911 = vmatprep.mubr.f32.mxu1 %v1469_v23 }
 0x1ab   : > { %v1437_v14 = vpop.permute.xlu0 %1436  ;;  %v1357_v57 = vmul.f32 %v4136_v13, %v1320_v56  ;;  %2043 = vmatprep.subr.mxu0 %v1974_v54  ;;  %3155 = vmatprep.subr.mxu1 %v1978_v55  ;;  %v1970_v13 = vld [vmem:[%s4906_s5 + $0x60] sm:$0xff] }
 0x1ac   : > { %v1470_v22 = vmul.f32 %v4154_v30, %v1437_v14  ;;  %2044 = vmatpush1.msra.mxu0 %v1973_v59  ;;  %3156 = vmatpush3.msra.mxu1 %v1978_v55 }
 0x1ad   : > { %1761 = vmatmul.mubr.f32.gmra.mxu0 %v1357_v57  ;;  %1912 = vmatmul.mubr.f32.gmra.mxu1 %v1357_v57 }
 0x1ae   : > { %v1325_v61 = vpop.permute.xlu1 %1324  ;;  %1766 = vmatprep.mubr.f32.mxu0 %v1470_v22  ;;  %1916 = vmatprep.mubr.f32.mxu1 %v1470_v22 }
 0x1af   : > { %v1442_v30 = vpop.permute.xlu0 %1441  ;;  %v1358_v0 = vmul.f32 %v4152_v29, %v1325_v61  ;;  %2045 = vmatprep.subr.mxu0 %v1971_v58  ;;  %3157 = vmatprep.subr.mxu1 %v1975_v34  ;;  %v1967_v29 = vld [vmem:[%s4906_s5 + $0x48] sm:$0xff] }
 0x1b0   : > { %v1471_v5 = vmul.f32 %v4170_v50, %v1442_v30  ;;  %2046 = vmatpush1.msra.mxu0 %v1970_v13  ;;  %3158 = vmatpush3.msra.mxu1 %v1975_v34 }
 0x1b1   : > { %1767 = vmatmul.mubr.f32.gmra.mxu0 %v1358_v0  ;;  %1917 = vmatmul.mubr.f32.gmra.mxu1 %v1358_v0 }
 0x1b2   : > { %v1330_v7 = vpop.permute.xlu1 %1329  ;;  %1772 = vmatprep.mubr.f32.mxu0 %v1471_v5  ;;  %1921 = vmatprep.mubr.f32.mxu1 %v1471_v5 }
 0x1b3   : > { %v1447_v50 = vpop.permute.xlu0 %1446  ;;  %v1359_v45 = vmul.f32 %v4168_v49, %v1330_v7  ;;  %2047 = vmatprep.subr.mxu0 %v1968_v6  ;;  %3159 = vmatprep.subr.mxu1 %v1972_v33  ;;  %v1964_v49 = vld [vmem:[%s4906_s5 + $0x30] sm:$0xff] }
 0x1b4   : > { %v1472_v8 = vmul.f32 %v4186_v4, %v1447_v50  ;;  %2048 = vmatpush1.msra.mxu0 %v1967_v29  ;;  %3160 = vmatpush3.msra.mxu1 %v1972_v33 }
 0x1b5   : > { %1773 = vmatmul.mubr.f32.gmra.mxu0 %v1359_v45  ;;  %1922 = vmatmul.mubr.f32.gmra.mxu1 %v1359_v45 }
 0x1b6   : > { %v1335_v15 = vpop.permute.xlu1 %1334  ;;  %1778 = vmatprep.mubr.f32.mxu0 %v1472_v8  ;;  %1926 = vmatprep.mubr.f32.mxu1 %v1472_v8 }
 0x1b7   : > { %v1452_v4 = vpop.permute.xlu0 %1451  ;;  %v1360_v44 = vmul.f32 %v4184_v3, %v1335_v15  ;;  %2049 = vmatprep.subr.mxu0 %v1965_v9  ;;  %3161 = vmatprep.subr.mxu1 %v1969_v12  ;;  %v1961_v3 = vld [vmem:[%s4906_s5 + $0x18] sm:$0xff] }
 0x1b8   : > { %v1473_v16 = vmul.f32 %v4202_v24, %v1452_v4  ;;  %2050 = vmatpush1.msra.mxu0 %v1964_v49  ;;  %3162 = vmatpush3.msra.mxu1 %v1969_v12 }
 0x1b9   : > { %1779 = vmatmul.mubr.f32.gmra.mxu0 %v1360_v44  ;;  %1927 = vmatmul.mubr.f32.gmra.mxu1 %v1360_v44 }
 0x1ba   : > { %v1340_v20 = vpop.permute.xlu1 %1339  ;;  %1784 = vmatprep.mubr.f32.mxu0 %v1473_v16  ;;  %1931 = vmatprep.mubr.f32.mxu1 %v1473_v16 }
 0x1bb   : > { %v1457_v24 = vpop.permute.xlu0 %1456  ;;  %v1361_v25 = vmul.f32 %v4200_v21, %v1340_v20  ;;  %2051 = vmatprep.subr.mxu0 %v1962_v1  ;;  %3163 = vmatprep.subr.mxu1 %v1966_v19  ;;  %v1958_v21 = vld [vmem:[%s4906_s5] sm:$0xff] }
 0x1bc   : > { %v1474_v26 = vmul.f32 %v4218_v42, %v1457_v24  ;;  %2052 = vmatpush1.msra.mxu0 %v1961_v3  ;;  %3164 = vmatpush3.msra.mxu1 %v1966_v19 }
 0x1bd   : > { %1785 = vmatmul.mubr.f32.gmra.mxu0 %v1361_v25  ;;  %1932 = vmatmul.mubr.f32.gmra.mxu1 %v1361_v25 }
 0x1be   : > { %v1345_v17 = vpop.permute.xlu1 %1344  ;;  %1790 = vmatprep.mubr.f32.mxu0 %v1474_v26  ;;  %1936 = vmatprep.mubr.f32.mxu1 %v1474_v26 }
 0x1bf   : > { %v1362_v42 = vmul.f32 %v4216_v41, %v1345_v17  ;;  %2053 = vmatprep.subr.mxu0 %v1959_v2  ;;  %3165 = vmatprep.subr.mxu1 %v1963_v27  ;;  %v3545_v41 = vmov 0.0  }
 0x1c0   : > { %2054 = vmatpush1.msra.mxu0 %v1958_v21  ;;  %3166 = vmatpush3.msra.mxu1 %v1963_v27 }
 0x1c1   : > { %1791 = vmatmul.mubr.f32.gmra.mxu0 %v1362_v42  ;;  %1937 = vmatmul.mubr.f32.gmra.mxu1 %v1362_v42 }
 0x1c2   : > { %2087 = vmatprep.mubr.f32.mxu0 %v3545_v41  ;;  %3167 = vmatprep.subr.mxu1 %v1960_v28 }
 0x1c3   : > { %3168 = vmatpush3.msra.mxu1 %v1960_v28  ;;  %3169 = vmatprep.mubr.f32.mxu1 %v4431_v35 }
 0x1c5   : > { %2088 = vmatmul.mubr.f32.vlgmr.msra.gmra.mxu0 %v4431_v35  ;;  %3170 = vmatmul.mubr.f32.vlgmr.msra.gmra.mxu1 %v4435_v36 }
 0x1c6   : > { %2093 = vmatprep.mubr.f32.mxu0 %v3545_v41  ;;  %3172 = vmatprep.mubr.f32.mxu1 %v4439_v37 }
 0x1c9   : > { %2094 = vmatmul.mubr.f32.gmra.mxu0 %v4435_v36  ;;  %3173 = vmatmul.mubr.f32.gmra.mxu1 %v4445_v18 }
 0x1ca   : > { %2099 = vmatprep.mubr.f32.mxu0 %v3545_v41  ;;  %3175 = vmatprep.mubr.f32.mxu1 %v1946_v38 }
 0x1cd   : > { %2100 = vmatmul.mubr.f32.gmra.mxu0 %v4439_v37  ;;  %3176 = vmatmul.mubr.f32.gmra.mxu1 %v4452_v32 }
 0x1ce   : > { %2105 = vmatprep.mubr.f32.mxu0 %v3545_v41  ;;  %3178 = vmatprep.mubr.f32.mxu1 %v1948_v39 }
 0x1d1   : > { %2106 = vmatmul.mubr.f32.gmra.mxu0 %v4445_v18  ;;  %3179 = vmatmul.mubr.f32.gmra.mxu1 %v1949_v40 }
 0x1d2   : > { %2111 = vmatprep.mubr.f32.mxu0 %v3545_v41  ;;  %3181 = vmatprep.mubr.f32.mxu1 %v1950_v63 }
 0x1d5   : > { %2112 = vmatmul.mubr.f32.gmra.mxu0 %v1946_v38  ;;  %3182 = vmatmul.mubr.f32.gmra.mxu1 %v1951_v43 }
 0x1d6   : > { %2117 = vmatprep.mubr.f32.mxu0 %v3545_v41  ;;  %3184 = vmatprep.mubr.f32.mxu1 %v1952_v31 }
 0x1d9   : > { %2118 = vmatmul.mubr.f32.gmra.mxu0 %v4452_v32  ;;  %3185 = vmatmul.mubr.f32.gmra.mxu1 %v1953_v11 }
 0x1da   : > { %2123 = vmatprep.mubr.f32.mxu0 %v3545_v41  ;;  %3187 = vmatprep.mubr.f32.mxu1 %v1954_v48 }
 0x1dd   : > { %2124 = vmatmul.mubr.f32.gmra.mxu0 %v1948_v39  ;;  %3188 = vmatmul.mubr.f32.gmra.mxu1 %v1955_v62 }
 0x1de   : > { %2129 = vmatprep.mubr.f32.mxu0 %v3545_v41  ;;  %3190 = vmatprep.mubr.f32.mxu1 %v1956_v46 }
 0x1e1   : > { %2130 = vmatmul.mubr.f32.gmra.mxu0 %v1949_v40  ;;  %3191 = vmatmul.mubr.f32.gmra.mxu1 %v1957_v51 }
 0x1e2   : > { %2135 = vmatprep.mubr.f32.mxu0 %v3545_v41 }
 0x1e5   : > { %2136 = vmatmul.mubr.f32.gmra.mxu0 %v1950_v63 }
 0x1e6   : > { %2141 = vmatprep.mubr.f32.mxu0 %v3545_v41 }
 0x1e9   : > { %2142 = vmatmul.mubr.f32.gmra.mxu0 %v1951_v43 }
 0x1ea   : > { %2147 = vmatprep.mubr.f32.mxu0 %v3545_v41 }
 0x1ed   : > { %2148 = vmatmul.mubr.f32.gmra.mxu0 %v1952_v31 }
 0x1ee   : > { %2153 = vmatprep.mubr.f32.mxu0 %v3545_v41 }
 0x1f1   : > { %2154 = vmatmul.mubr.f32.gmra.mxu0 %v1953_v11 }
 0x1f2   : > { %2159 = vmatprep.mubr.f32.mxu0 %v3545_v41 }
 0x1f5   : > { %2160 = vmatmul.mubr.f32.gmra.mxu0 %v1954_v48  ;;  %v1621_v48 = vlaneseq }
 0x1f6   : > { %2165 = vmatprep.mubr.f32.mxu0 %v3545_v41 }
 0x1f9   : > { %2166 = vmatmul.mubr.f32.gmra.mxu0 %v1955_v62 }
 0x1fa   : > { %2171 = vmatprep.mubr.f32.mxu0 %v3545_v41 }
 0x1fd   : > { %2172 = vmatmul.mubr.f32.gmra.mxu0 %v1956_v46 }
 0x1fe   : > { %2177 = vmatprep.mubr.f32.mxu0 %v3545_v41 }
 0x201   : > { %2178 = vmatmul.mubr.f32.gmra.mxu0 %v1957_v51 }
 0x245   : > { %v4481_v52 = vpop.f32.mrf.mxu0  ;;  %v3057_v47 = vpop.f32.mrf.mxu1 }
 0x247   : > { %v4483_v10 = vpop.f32.mrf.mxu0  ;;  %v3058_v60 = vpop.f32.mrf.mxu1 }
 0x248   : > { %v4485_v53 = vadd.f32 %v3058_v60, %v3057_v47 }
 0x249   : > { %v4487_v23 = vpop.f32.mrf.mxu0  ;;  %v4489_v54 = vpop.f32.mrf.mxu1 }
 0x24b   : > { %v4491_v55 = vpop.f32.mrf.mxu0  ;;  %v4493_v59 = vpop.f32.mrf.mxu1 }
 0x24d   : > { %v4495_v56 = vpop.f32.mrf.mxu0  ;;  %v3063_v14 = vpop.f32.mrf.mxu1 }
 0x24f   : > { %v4497_v57 = vpop.f32.mrf.mxu0  ;;  %v3064_v22 = vpop.f32.mrf.mxu1 }
 0x250   : > { %v4499_v58 = vadd.f32 %v3064_v22, %v3063_v14  ;;  %v4565_v14 = vshrl.u32 %v1621_v48, 7  ;;  %v4587_v48 = vld [vmem:[%s4908_s7] sm:$0x7] }
 0x251   : > { %v4501_v34 = vpop.f32.mrf.mxu0  ;;  %v4503_v13 = vpop.f32.mrf.mxu1 }
 0x253   : > { %v4505_v61 = vpop.f32.mrf.mxu0  ;;  %v4507_v30 = vpop.f32.mrf.mxu1 }
 0x255   : > { %v4509_v0 = vpop.f32.mrf.mxu0  ;;  %v3069_v5 = vpop.f32.mrf.mxu1 }
 0x257   : > { %v4511_v6 = vpop.f32.mrf.mxu0  ;;  %v3070_v33 = vpop.f32.mrf.mxu1 }
 0x258   : > { %v4513_v29 = vadd.f32 %v3070_v33, %v3069_v5 }
 0x259   : > { %v4515_v7 = vpop.f32.mrf.mxu0  ;;  %v4517_v50 = vpop.f32.mrf.mxu1 }
 0x25b   : > { %v4519_v45 = vpop.f32.mrf.mxu0  ;;  %v4521_v8 = vpop.f32.mrf.mxu1 }
 0x25d   : > { %v4523_v9 = vpop.f32.mrf.mxu0  ;;  %v3075_v12 = vpop.f32.mrf.mxu1 }
 0x25f   : > { %v4525_v49 = vpop.f32.mrf.mxu0  ;;  %v3076_v15 = vpop.f32.mrf.mxu1 }
 0x260   : > { %v4527_v4 = vadd.f32 %v3076_v15, %v3075_v12 }
 0x261   : > { %v4529_v44 = vpop.f32.mrf.mxu0  ;;  %v4531_v16 = vpop.f32.mrf.mxu1 }
 0x263   : > { %v4533_v1 = vpop.f32.mrf.mxu0  ;;  %v4535_v19 = vpop.f32.mrf.mxu1 }
 0x265   : > { %v4537_v3 = vpop.f32.mrf.mxu0  ;;  %v3081_v20 = vpop.f32.mrf.mxu1 }
 0x267   : > { %v4539_v24 = vpop.f32.mrf.mxu0  ;;  %v3082_v25 = vpop.f32.mrf.mxu1 }
 0x268   : > { %v4541_v26 = vadd.f32 %v3082_v25, %v3081_v20  ;;  %v1623_v20 = vsub.s32 0, %v4565_v14 }
 0x269   : > { %v4543_v2 = vpop.f32.mrf.mxu0  ;;  %v3084_v27 = vpop.f32.mrf.mxu1 }
 0x26a   : > { %4919 = vst [vmem:[#allocation7_spill] sm:$0xff] %v4541_v26 }
 0x26b   : > { %v4545_v21 = vpop.f32.mrf.mxu0  ;;  %v3085_v17 = vpop.f32.mrf.mxu1 }
 0x26c   : > { %v4547_v42 = vadd.f32 %v3085_v17, %v3084_v27  ;;  %v1619_v27 = vld [vmem:[%s4907_s6] sm:$0x7] }
 0x26d   : > { %v4549_v28 = vpop.f32.mrf.mxu0  ;;  %v3087_v41 = vpop.f32.mrf.mxu1 }
 0x26e   : > { %4920 = vst [vmem:[#allocation8_spill] sm:$0xff] %v4547_v42 }
 0x26f   : > { %v4551_v38 = vpop.f32.mrf.mxu0  ;;  %v3088_v39 = vpop.f32.mrf.mxu1 }
 0x270   : > { %v4553_v40 = vadd.f32 %v3088_v39, %v3087_v41  ;;  %v1627_v39 = vsub.s32 1, %v4565_v14 }
 0x271   : > { %v4555_v63 = vpop.f32.mrf.mxu0  ;;  %v3090_v43 = vpop.f32.mrf.mxu1 }
 0x272   : > { %4921 = vst [vmem:[#allocation9_spill] sm:$0xff] %v4553_v40  ;;  %v4600_v40 = vrot.slane %v4587_v48, %v1623_v20 }
 0x273   : > { %v4557_v31 = vpop.f32.mrf.mxu0  ;;  %v3091_v11 = vpop.f32.mrf.mxu1 }
 0x274   : > { %v4559_v62 = vadd.f32 %v3091_v11, %v3090_v43 }
 0x275   : > { %v4561_v46 = vpop.f32.mrf.mxu0  ;;  %v3093_v51 = vpop.f32.mrf.mxu1 }
 0x276   : > { %4922 = vst [vmem:[#allocation10_spill] sm:$0xff] %v4559_v62 }
 0x277   : > { %v4563_v47 = vpop.f32.mrf.mxu0  ;;  %v3094_v60 = vpop.f32.mrf.mxu1 }
 0x278   : > { %v4567_v22 = vadd.f32 %v3094_v60, %v3093_v51  ;;  %v4589_v51 = vrot.slane %v1619_v27, %v1623_v20  ;;  %v4912_v60 = vsub.s32 2, %v4565_v14 }
 0x279   : > { %v4569_v5 = vpop.f32.mrf.mxu0  ;;  %v3096_v33 = vpop.f32.mrf.mxu1 }
 0x27a   : > { %4923 = vst [vmem:[#allocation11_spill] sm:$0xff] %v4567_v22  ;;  %v4594_v22 = vrot.slane %v1619_v27, %v1627_v39  ;;  %v4604_v37 = vrot.slane %v1619_v27, %v4912_v60 }
 0x27b   : > { %v4571_v12 = vpop.f32.mrf.mxu0  ;;  %v3097_v15 = vpop.f32.mrf.mxu1 }
 0x27c   : > { %v4574_v25 = vadd.f32 %v3097_v15, %v3096_v33  ;;  %v1705_v27 = vadd.f32 %v4483_v10, %v4594_v22  ;;  %v1715_v10 = vadd.f32 %v4495_v56, %v4589_v51 }
 0x27d   : > { %v4579_v17 = vpop.f32.mrf.mxu0  ;;  %v3099_v41 = vpop.f32.mrf.mxu1 }
 0x27e   : > { %4924 = vst [vmem:[#allocation12_spill] sm:$0xff] %v4574_v25 }
 0x27f   : > { %v4582_v43 = vpop.f32.mrf.mxu0  ;;  %v3100_v11 = vpop.f32.mrf.mxu1 }
 0x280   : > { %4925 = vst [vmem:[#allocation13_spill] sm:$0xff] %v4582_v43  ;;  %v4592_v33 = vadd.f32 %v3100_v11, %v3099_v41  ;;  %v4610_v11 = vrot.slane %v4587_v48, %v1627_v39 }
 0x281   : > { %v1792_v15 = vpop.f32.mrf.mxu0  ;;  %v3102_v25 = vpop.f32.mrf.mxu1 }
 0x282   : > { %4926 = vst [vmem:[#allocation14_spill] sm:$0xff] %v4592_v33  ;;  %v4597_v62 = vadd.f32 %v1792_v15, %v4589_v51  ;;  %v1703_v15 = vadd.f32 %v4481_v52, %v4589_v51 }
 0x283   : > { %v1794_v42 = vpop.f32.mrf.mxu0  ;;  %v3103_v32 = vpop.f32.mrf.mxu1 }
 0x284   : > { %4927 = vst [vmem:[#allocation15_spill] sm:$0xff] %v4597_v62  ;;  %v4607_v43 = vadd.f32 %v1794_v42, %v4594_v22  ;;  %v3104_v41 = vadd.f32 %v3103_v32, %v3102_v25  ;;  %v1709_v25 = vadd.f32 %v4487_v23, %v4589_v51 }
 0x285   : > { %v2089_v33 = vpop.f32.mrf.mxu0 }
 0x286   : > { %4928 = vst [vmem:[#allocation16_spill] sm:$0xff] %v4607_v43  ;;  %v4615_v20 = vadd.f32 %v3104_v41, %v4604_v37  ;;  %v2090_v62 = vadd.f32 %v2089_v33, %v4600_v40  ;;  %v1711_v41 = vadd.f32 %v4491_v55, %v4594_v22 }
 0x287   : > { %v2091_v26 = vpop.f32.mrf.mxu0 }
 0x288   : > { %4929 = vst [vmem:[#allocation17_spill] sm:$0xff] %v4615_v20  ;;  %v2329_v60 = vadd.f32 %v2090_v62, %v1703_v15  ;;  %v2092_v42 = vadd.f32 %v2091_v26, %v4610_v11 }
 0x289   : > { %v2095_v32 = vpop.f32.mrf.mxu0 }
 0x28a   : > { %v2861_v39 = vmul.f32 -1.442695, %v2329_v60  ;;  %v2441_v43 = vadd.f32 %v2092_v42, %v1705_v27  ;;  %v2096_v52 = vadd.f32 %v2095_v32, %v4600_v40  ;;  %v1721_v42 = vadd.f32 %v4501_v34, %v4589_v51 }
 0x28b   : > { %v2097_v18 = vpop.f32.mrf.mxu0  ;;  %v1727_v34 = vadd.f32 %v4509_v0, %v4589_v51  ;;  %v1729_v0 = vadd.f32 %v4511_v6, %v4594_v22  ;;  %v3068_v6 = vadd.f32 %v4507_v30, %v4503_v13  ;;  %v1739_v13 = vadd.f32 %v4523_v9, %v4589_v51 }
 0x28c   : > { %3349 = vpow2.f32 %v2861_v39  ;;  %v2330_v33 = vadd.f32 %v2096_v52, %v1709_v25  ;;  %v2098_v20 = vadd.f32 %v2097_v18, %v4610_v11  ;;  %v2877_v62 = vmul.f32 -1.442695, %v2441_v43 }
 0x28d   : > { %v2101_v26 = vpop.f32.mrf.mxu0  ;;  %v1723_v43 = vadd.f32 %v4505_v61, %v4594_v22 }
 0x28e   : > { %v2862_v15 = vmul.f32 -1.442695, %v2330_v33  ;;  %v2442_v35 = vadd.f32 %v2098_v20, %v1711_v41  ;;  %v2102_v23 = vadd.f32 %v2101_v26, %v4600_v40  ;;  %v1717_v41 = vadd.f32 %v4497_v57, %v4594_v22 }
 0x28f   : > { %v2103_v60 = vpop.f32.mrf.mxu0  ;;  %v3062_v57 = vadd.f32 %v4493_v59, %v4489_v54  ;;  %v4657_v59 = vadd.f32 %v4485_v53, %v4604_v37  ;;  %v3074_v53 = vadd.f32 %v4521_v8, %v4517_v50 }
 0x290   : > { %3351 = vpow2.f32 %v2862_v15  ;;  %v2331_v27 = vadd.f32 %v2102_v23, %v1715_v10  ;;  %v2878_v32 = vmul.f32 -1.442695, %v2442_v35  ;;  %v2104_v56 = vadd.f32 %v2103_v60, %v4610_v11 }
 0x291   : > { %v2107_v55 = vpop.f32.mrf.mxu0  ;;  %3353 = vpow2.f32 %v2877_v62 }
 0x292   : > { %v2863_v25 = vmul.f32 -1.442695, %v2331_v27  ;;  %v2108_v18 = vadd.f32 %v2107_v55, %v4600_v40  ;;  %v2443_v62 = vadd.f32 %v2104_v56, %v1717_v41  ;;  %v1733_v55 = vadd.f32 %v4515_v7, %v4589_v51 }
 0x293   : > { %v2109_v39 = vpop.f32.mrf.mxu0  ;;  %v1735_v41 = vadd.f32 %v4519_v45, %v4594_v22  ;;  %v4676_v45 = vadd.f32 %v4499_v58, %v4604_v37 }
 0x294   : > { %3355 = vpow2.f32 %v2863_v25  ;;  %v2332_v20 = vadd.f32 %v2108_v18, %v1721_v42  ;;  %v2110_v52 = vadd.f32 %v2109_v39, %v4610_v11  ;;  %v4930_v18 = vsub.s32 2, %v4565_v14  ;;  %v4662_v14 = vpop.f32.mrf.mxu1 }
 0x295   : > { %v2113_v35 = vpop.f32.mrf.mxu0  ;;  %3357 = vpow2.f32 %v2878_v32  ;;  %v2879_v39 = vmul.f32 -1.442695, %v2443_v62 }
 0x296   : > { %v2864_v33 = vmul.f32 -1.442695, %v2332_v20  ;;  %v2444_v10 = vadd.f32 %v2110_v52, %v1723_v43  ;;  %v2114_v26 = vadd.f32 %v2113_v35, %v4600_v40  ;;  %v4652_v56 = vrot.slane %v4587_v48, %v4930_v18  ;;  %v2250_v8 = vpop.f32.mrf.mxu1 }
 0x297   : > { %v2115_v15 = vpop.f32.mrf.mxu0  ;;  %v4665_v52 = vadd.f32 %v3062_v57, %v4604_v37 }
 0x298   : > { %3359 = vpow2.f32 %v2864_v33  ;;  %v2880_v61 = vmul.f32 -1.442695, %v2444_v10  ;;  %v2333_v23 = vadd.f32 %v2114_v26, %v1727_v34  ;;  %v2116_v60 = vadd.f32 %v2115_v15, %v4610_v11 }
 0x299   : > { %v3350_v27 = vpop.eup %3349  ;;  %v2119_v42 = vpop.f32.mrf.mxu0 }
 0x29a   : > { %v2393_v32 = vadd.f32 1.0, %v3350_v27  ;;  %v2865_v25 = vmul.f32 -1.442695, %v2333_v23  ;;  %3361 = vpow2.f32 %v2880_v61  ;;  %v2445_v43 = vadd.f32 %v2116_v60, %v1729_v0 }
 0x29b   : > { %v2120_v20 = vadd.f32 %v2119_v42, %v4600_v40  ;;  %v2121_v54 = vpop.f32.mrf.mxu0  ;;  %v4679_v23 = vadd.f32 %v3068_v6, %v4604_v37  ;;  %v1741_v60 = vadd.f32 %v4525_v49, %v4594_v22  ;;  %v1745_v27 = vadd.f32 %v4529_v44, %v4589_v51 }
 0x29c   : > { %3363 = vrcp.f32 %v2393_v32  ;;  %v2122_v7 = vadd.f32 %v2121_v54, %v4610_v11  ;;  %v2881_v26 = vmul.f32 -1.442695, %v2445_v43  ;;  %v4694_v49 = vadd.f32 %v3074_v53, %v4604_v37 }
 0x29d   : > { %v3352_v48 = vpop.eup %3351  ;;  %3365 = vpow2.f32 %v2865_v25  ;;  %v2334_v34 = vadd.f32 %v2120_v20, %v1733_v55  ;;  %v2125_v35 = vpop.f32.mrf.mxu0 }
 0x29e   : > { %v2394_v30 = vadd.f32 1.0, %v3352_v48  ;;  %v2126_v33 = vadd.f32 %v2125_v35, %v4600_v40  ;;  %v3354_v10 = vpop.eup %3353  ;;  %3367 = vpow2.f32 %v2879_v39  ;;  %v2446_v15 = vadd.f32 %v2122_v7, %v1735_v41  ;;  %v4687_v25 = vpop.f32.mrf.mxu1 }
 0x29f   : > { %v2866_v62 = vmul.f32 -1.442695, %v2334_v34  ;;  %v2127_v61 = vpop.f32.mrf.mxu0  ;;  %v2505_v42 = vadd.f32 1.0, %v3354_v10  ;;  %v4691_v39 = vadd.f32 %v4513_v29, %v4604_v37  ;;  %v1747_v48 = vadd.f32 %v4533_v1, %v4594_v22 }
 0x2a0   : > { %3369 = vrcp.f32 %v2394_v30  ;;  %v2335_v50 = vadd.f32 %v2126_v33, %v1739_v13  ;;  %v2128_v57 = vadd.f32 %v2127_v61, %v4610_v11  ;;  %v2882_v44 = vmul.f32 -1.442695, %v2446_v15  ;;  %v2260_v30 = vpop.f32.mrf.mxu1 }
 0x2a1   : > { %v3356_v9 = vpop.eup %3355  ;;  %3371 = vpow2.f32 %v2866_v62  ;;  %v2131_v0 = vpop.f32.mrf.mxu0  ;;  %v3080_v41 = vadd.f32 %v4535_v19, %v4531_v16  ;;  %v2251_v34 = vadd.f32 %v2250_v8, %v4652_v56  ;;  %v4704_v33 = vadd.f32 %v4527_v4, %v4604_v37 }
 0x2a2   : > { %v2395_v58 = vadd.f32 1.0, %v3356_v9  ;;  %v2867_v55 = vmul.f32 -1.442695, %v2335_v50  ;;  %v2132_v32 = vadd.f32 %v2131_v0, %v4600_v40  ;;  %v3358_v18 = vpop.eup %3357  ;;  %3373 = vpow2.f32 %v2881_v26  ;;  %v4710_v61 = vpop.f32.mrf.mxu1 }
 0x2a3   : > { %v2133_v43 = vpop.f32.mrf.mxu0  ;;  %v2447_v20 = vadd.f32 %v2128_v57, %v1741_v60  ;;  %v2506_v35 = vadd.f32 1.0, %v3358_v18  ;;  %v1751_v10 = vadd.f32 %v4537_v3, %v4589_v51  ;;  %v4713_v8 = vadd.f32 %v3080_v41, %v4604_v37 }
 0x2a4   : > { %3375 = vrcp.f32 %v2395_v58  ;;  %v2336_v54 = vadd.f32 %v2132_v32, %v1745_v27  ;;  %v2134_v6 = vadd.f32 %v2133_v43, %v4610_v11  ;;  %v1753_v4 = vadd.f32 %v4539_v24, %v4594_v22 }
 0x2a5   : > { %v3360_v7 = vpop.eup %3359  ;;  %3377 = vpow2.f32 %v2867_v55  ;;  %v2137_v29 = vpop.f32.mrf.mxu0  ;;  %v2883_v26 = vmul.f32 -1.442695, %v2447_v20  ;;  %v2256_v27 = vadd.f32 %v4662_v14, %v4652_v56  ;;  %v1757_v24 = vadd.f32 %v4543_v2, %v4589_v51 }
 0x2a6   : > { %3379 = vrcp.f32 %v2505_v42  ;;  %v2396_v53 = vadd.f32 1.0, %v3360_v7  ;;  %v2868_v13 = vmul.f32 -1.442695, %v2336_v54  ;;  %v2138_v1 = vadd.f32 %v2137_v29, %v4600_v40  ;;  %v2270_v54 = vpop.f32.mrf.mxu1 }
 0x2a7   : > { %3381 = vpow2.f32 %v2882_v44  ;;  %v2139_v16 = vpop.f32.mrf.mxu0  ;;  %v3362_v19 = vpop.eup %3361  ;;  %v2448_v62 = vadd.f32 %v2134_v6, %v1747_v48  ;;  %v1759_v14 = vadd.f32 %v4545_v21, %v4594_v22  ;;  %v1763_v7 = vadd.f32 %v4549_v28, %v4589_v51 }
 0x2a8   : > { %3383 = vrcp.f32 %v2396_v53  ;;  %v2140_v15 = vadd.f32 %v2139_v16, %v4610_v11  ;;  %v2337_v3 = vadd.f32 %v2138_v1, %v1751_v10  ;;  %v2508_v42 = vadd.f32 1.0, %v3362_v19  ;;  %v4729_v53 = vpop.f32.mrf.mxu1 }
 0x2a9   : > { %v3364_v50 = vpop.eup %3363  ;;  %3385 = vpow2.f32 %v2868_v13  ;;  %v2143_v9 = vpop.f32.mrf.mxu0  ;;  %v2884_v43 = vmul.f32 -1.442695, %v2448_v62  ;;  %v2261_v41 = vadd.f32 %v2260_v30, %v4652_v56  ;;  %v1765_v28 = vadd.f32 %v4551_v38, %v4594_v22 }
 0x2aa   : > { %v3366_v60 = vpop.eup %3365  ;;  %3387 = vrcp.f32 %v2506_v35  ;;  %v2553_v57 = vmul.f32 %v3364_v50, %v2251_v34  ;;  %v2144_v0 = vadd.f32 %v2143_v9, %v4600_v40  ;;  %v2869_v55 = vmul.f32 -1.442695, %v2337_v3  ;;  %v2280_v9 = vpop.f32.mrf.mxu1 }
 0x2ab   : > { %v2397_v58 = vadd.f32 1.0, %v3366_v60  ;;  %v2449_v32 = vadd.f32 %v2140_v15, %v1753_v4  ;;  %v2145_v18 = vpop.f32.mrf.mxu0  ;;  %v3368_v44 = vpop.eup %3367  ;;  %3389 = vpow2.f32 %v2883_v26  ;;  %v1769_v30 = vadd.f32 %v4555_v63, %v4589_v51 }
 0x2ac   : > { %v2569_v20 = vadd.f32 %v2553_v57, %v4657_v59  ;;  %v2338_v2 = vadd.f32 %v2144_v0, %v1757_v24  ;;  %v2146_v21 = vadd.f32 %v2145_v18, %v4610_v11  ;;  %v4739_v26 = vadd.f32 %v4557_v31, %v4594_v22 }
 0x2ad   : > { %v3370_v6 = vpop.eup %3369  ;;  %3391 = vrcp.f32 %v2397_v58  ;;  %v2149_v48 = vpop.f32.mrf.mxu0  ;;  %v2885_v13 = vmul.f32 -1.442695, %v2449_v32  ;;  %v1775_v62 = vadd.f32 %v4561_v46, %v4589_v51  ;;  %v2266_v15 = vadd.f32 %v4687_v25, %v4652_v56 }
 0x2ae   : > { %v3372_v29 = vpop.eup %3371  ;;  %3393 = vpow2.f32 %v2869_v55  ;;  %v2554_v34 = vmul.f32 %v3370_v6, %v2256_v27  ;;  %v2150_v35 = vadd.f32 %v2149_v48, %v4600_v40  ;;  %v2870_v4 = vmul.f32 -1.442695, %v2338_v2  ;;  %v4751_v58 = vpop.f32.mrf.mxu1 }
 0x2af   : > { %3395 = vrcp.f32 %v2508_v42  ;;  %v2398_v59 = vadd.f32 1.0, %v3372_v29  ;;  %v2151_v10 = vpop.f32.mrf.mxu0  ;;  %v3374_v1 = vpop.eup %3373  ;;  %v2507_v60 = vadd.f32 1.0, %v3368_v44  ;;  %v2450_v31 = vadd.f32 %v2146_v21, %v1759_v14 }
 0x2b0   : > { %3397 = vpow2.f32 %v2884_v43  ;;  %v2570_v16 = vadd.f32 %v2554_v34, %v4665_v52  ;;  %v2339_v63 = vadd.f32 %v2150_v35, %v1763_v7  ;;  %v2509_v0 = vadd.f32 1.0, %v3374_v1  ;;  %v2290_v2 = vpop.f32.mrf.mxu1 }
 0x2b1   : > { %v3376_v19 = vpop.eup %3375  ;;  %3399 = vrcp.f32 %v2398_v59  ;;  %v2155_v50 = vpop.f32.mrf.mxu0  ;;  %v2152_v25 = vadd.f32 %v2151_v10, %v4610_v11  ;;  %v4755_v32 = vadd.f32 %v4563_v47, %v4594_v22  ;;  %v4759_v18 = vadd.f32 %v4569_v5, %v4589_v51 }
 0x2b2   : > { %v3378_v38 = vpop.eup %3377  ;;  %3401 = vtanh.f32 %v2570_v16  ;;  %v2555_v3 = vmul.f32 %v3376_v19, %v2261_v41  ;;  %v2156_v44 = vadd.f32 %v2155_v50, %v4600_v40  ;;  %v2886_v48 = vmul.f32 -1.442695, %v2450_v31 }
 0x2b3   : > { %v4745_v52 = vpop.eup %3379  ;;  %v2399_v27 = vadd.f32 1.0, %v3378_v38  ;;  %3403 = vpow2.f32 %v2885_v13  ;;  %v4747_v57 = vpop.f32.mrf.mxu0  ;;  %v4766_v5 = vadd.f32 %v4571_v12, %v4594_v22  ;;  %v2451_v34 = vadd.f32 %v2152_v25, %v1765_v28 }
 0x2b4   : > { %v3382_v46 = vpop.eup %3381  ;;  %3405 = vtanh.f32 %v2569_v20  ;;  %v2571_v42 = vadd.f32 %v2555_v3, %v4676_v45  ;;  %v2871_v20 = vmul.f32 -1.442695, %v2339_v63  ;;  %v2271_v45 = vadd.f32 %v2270_v54, %v4652_v56 }
 0x2b5   : > { %v3384_v55 = vpop.eup %3383  ;;  %3407 = vrcp.f32 %v2399_v27  ;;  %v2161_v24 = vpop.f32.mrf.mxu0  ;;  %v4771_v54 = vadd.f32 %v4579_v17, %v4589_v51  ;;  %v2510_v59 = vadd.f32 1.0, %v3382_v46  ;;  %v2340_v13 = vadd.f32 %v2156_v44, %v1769_v30 }
 0x2b6   : > { %v3386_v43 = vpop.eup %3385  ;;  %3409 = vpow2.f32 %v2870_v4  ;;  %v2556_v6 = vmul.f32 %v3384_v55, %v2266_v15  ;;  %v2162_v47 = vadd.f32 %v2161_v24, %v4600_v40  ;;  %v2276_v12 = vadd.f32 %v4710_v61, %v4652_v56 }
 0x2b7   : > { %v3388_v14 = vpop.eup %3387  ;;  %3411 = vrcp.f32 %v2507_v60  ;;  %v2400_v7 = vadd.f32 1.0, %v3386_v43  ;;  %v2163_v41 = vpop.f32.mrf.mxu0  ;;  %v4777_v1 = vadd.f32 %v4729_v53, %v4652_v56  ;;  %v4781_v19 = vadd.f32 %v2290_v2, %v4652_v56 }
 0x2b8   : > { %3413 = vrcp.f32 %v2509_v0  ;;  %v2572_v29 = vadd.f32 %v2556_v6, %v4679_v23  ;;  %v3390_v35 = vpop.eup %3389  ;;  %v2281_v23 = vadd.f32 %v2280_v9, %v4652_v56  ;;  %v2341_v16 = vadd.f32 %v2162_v47, %v1775_v62 }
 0x2b9   : > { %3415 = vrcp.f32 %v2400_v7  ;;  %v2167_v21 = vpop.f32.mrf.mxu0  ;;  %v2601_v50 = vsub.f32 1.0, %v4745_v52  ;;  %v2887_v61 = vmul.f32 -1.442695, %v2451_v34  ;;  %v2872_v53 = vmul.f32 -1.442695, %v2340_v13 }
 0x2ba   : > { %v3392_v10 = vpop.eup %3391  ;;  %3417 = vpow2.f32 %v2871_v20  ;;  %v2168_v63 = vadd.f32 %v2167_v21, %v4600_v40  ;;  %v2634_v9 = vmul.f32 %v3388_v14, %v4435_v36  ;;  %v2511_v60 = vadd.f32 1.0, %v3390_v35  ;;  %v4932_v21 = vld [vmem:[#allocation5_spill] sm:$0xff] }
 0x2bb   : > { %v3394_v28 = vpop.eup %3393  ;;  %3419 = vpow2.f32 %v2886_v48  ;;  %v2557_v17 = vmul.f32 %v3392_v10, %v2271_v45  ;;  %v2169_v51 = vpop.f32.mrf.mxu0  ;;  %v2602_v27 = vsub.f32 1.0, %v3388_v14  ;;  %v2158_v46 = vadd.f32 %v4747_v57, %v4610_v11  ;;  %v4931_v14 = vld [vmem:[#allocation3_spill] sm:$0xff] }
 0x2bc   : > { %v4783_v30 = vpop.eup %3395  ;;  %v2401_v15 = vadd.f32 1.0, %v3394_v28  ;;  %3421 = vtanh.f32 %v2572_v29  ;;  %v2873_v0 = vmul.f32 -1.442695, %v2341_v16  ;;  %v2164_v6 = vadd.f32 %v2163_v41, %v4610_v11 }
 0x2bd   : > { %v3398_v38 = vpop.eup %3397  ;;  %3423 = vrcp.f32 %v2510_v59  ;;  %v2573_v4 = vadd.f32 %v2557_v17, %v4691_v39  ;;  %v2173_v62 = vpop.f32.mrf.mxu0  ;;  %v2633_v7 = vmul.f32 %v4745_v52, %v4931_v14  ;;  %v2452_v41 = vadd.f32 %v2158_v46, %v4739_v26 }
 0x2be   : > { %v3400_v3 = vpop.eup %3399  ;;  %3425 = vrcp.f32 %v2401_v15  ;;  %v2512_v24 = vadd.f32 1.0, %v3398_v38  ;;  %v2174_v43 = vadd.f32 %v2173_v62, %v4600_v40  ;;  %v2636_v10 = vmul.f32 %v4783_v30, %v4932_v21 }
 0x2bf   : > { %v3402_v31 = vpop.eup %3401  ;;  %3427 = vtanh.f32 %v2571_v42  ;;  %v2558_v25 = vmul.f32 %v3400_v3, %v2276_v12  ;;  %v2175_v55 = vpop.f32.mrf.mxu0  ;;  %v2342_v42 = vadd.f32 %v2168_v63, %v4759_v18  ;;  %v2453_v12 = vadd.f32 %v2164_v6, %v4755_v32 }
 0x2c0   : > { %v3404_v44 = vpop.eup %3403  ;;  %v2618_v39 = vmul.f32 %v3402_v31, %v2602_v27  ;;  %3429 = vpow2.f32 %v2887_v61  ;;  %v2343_v35 = vadd.f32 %v2174_v43, %v4771_v54  ;;  %v2170_v16 = vadd.f32 %v2169_v51, %v4610_v11  ;;  %v4934_v31 = vld [vmem:[#allocation7_spill] sm:$0xff]  ;;  %v4831_v6 = vpop.f32.mrf.mxu1 }
 0x2c1   : > { %v3406_v20 = vpop.eup %3405  ;;  %3431 = vpow2.f32 %v2872_v53  ;;  %v2574_v36 = vadd.f32 %v2558_v25, %v4694_v49  ;;  %v2179_v45 = vpop.f32.mrf.mxu0  ;;  %v2513_v49 = vadd.f32 1.0, %v3404_v44  ;;  %v2874_v26 = vmul.f32 -1.442695, %v2342_v42  ;;  %v4936_v44 = vld [vmem:[#allocation15_spill] sm:$0xff] }
 0x2c2   : > { %v3408_v57 = vpop.eup %3407  ;;  %3433 = vrcp.f32 %v2511_v60  ;;  %v2650_v48 = vadd.f32 %v2634_v9, %v2618_v39  ;;  %v2617_v47 = vmul.f32 %v3406_v20, %v2601_v50  ;;  %v2888_v15 = vmul.f32 -1.442695, %v2452_v41  ;;  %v4933_v9 = vld [vmem:[#allocation16_spill] sm:$0xff] }
 0x2c3   : > { %v3410_v29 = vpop.eup %3409  ;;  %3435 = vpow2.f32 %v2873_v0  ;;  %v2559_v18 = vmul.f32 %v3408_v57, %v2281_v23  ;;  %v2181_v59 = vpop.f32.mrf.mxu0  ;;  %v2604_v23 = vsub.f32 1.0, %v4783_v30  ;;  %v2875_v53 = vmul.f32 -1.442695, %v2343_v35  ;;  %v4937_v39 = vld [vmem:[#allocation4_spill] sm:$0xff]  ;;  %v4938_v35 = vld [vmem:[#allocation6_spill] sm:$0xff] }
 0x2c4   : > { %v3412_v34 = vpop.eup %3411  ;;  %2666 = vst [vmem:[%s4801_s21 + $0x8] sm:$0xff] %v2650_v48  ;;  %v2649_v2 = vadd.f32 %v2633_v7, %v2617_v47  ;;  %v2402_v52 = vadd.f32 1.0, %v3410_v29  ;;  %3437 = vtanh.f32 %v2574_v36  ;;  %v2182_v61 = vadd.f32 %v2181_v59, %v4610_v11 }
 0x2c5   : > { %v4806_v13 = vpop.eup %3413  ;;  %3439 = vrcp.f32 %v2512_v24  ;;  %v2575_v17 = vadd.f32 %v2559_v18, %v4704_v33  ;;  %v2180_v63 = vadd.f32 %v2179_v45, %v4600_v40  ;;  %v2889_v3 = vmul.f32 -1.442695, %v2453_v12 }
 0x2c6   : > { %v3416_v28 = vpop.eup %3415  ;;  %2665 = vst [vmem:[%s4801_s21] sm:$0xff] %v2649_v2  ;;  %3441 = vrcp.f32 %v2402_v52  ;;  %v2176_v33 = vadd.f32 %v2175_v55, %v4610_v11  ;;  %v4822_v60 = vadd.f32 %v2182_v61, %v4933_v9  ;;  %v1904_v46 = vadd.f32 %v4934_v31, %v4604_v37  ;;  %v2300_v2 = vpop.f32.mrf.mxu1 }
 0x2c7   : > { %v3418_v54 = vpop.eup %3417  ;;  %3443 = vtanh.f32 %v2573_v4  ;;  %v2560_v50 = vmul.f32 %v3416_v28, %v4777_v1  ;;  %v2454_v1 = vadd.f32 %v2170_v16, %v4766_v5  ;;  %v2603_v0 = vsub.f32 1.0, %v3412_v34 }
 0x2c8   : > { %v3420_v38 = vpop.eup %3419  ;;  %3445 = vrcp.f32 %v2513_v49  ;;  %v2403_v32 = vadd.f32 1.0, %v3418_v54  ;;  %v2344_v24 = vadd.f32 %v2180_v63, %v4936_v44  ;;  %v2635_v43 = vmul.f32 %v3412_v34, %v4937_v39  ;;  %v3189_v63 = vpop.f32.mrf.mxu1  ;;  %v3510_v44 = vld [vmem:[%s4424_s14 + $0x38] sm:$0xff] }
 0x2c9   : > { %v3422_v62 = vpop.eup %3421  ;;  %3447 = vpow2.f32 %v2874_v26  ;;  %v2576_v51 = vadd.f32 %v2560_v50, %v4713_v8  ;;  %v2514_v40 = vadd.f32 1.0, %v3420_v38  ;;  %v4935_v8 = vld [vmem:[#allocation13_spill] sm:$0xff]  ;;  %v2890_v45 = vmul.f32 -1.442695, %v2454_v1  ;;  %v4939_v26 = vld [vmem:[#allocation8_spill] sm:$0xff]  ;;  %v3509_v50 = vld [vmem:[%s4424_s14 + $0x20] sm:$0xff] }
 0x2ca   : > { %v3424_v30 = vpop.eup %3423  ;;  %3449 = vrcp.f32 %v2403_v32  ;;  %v2620_v4 = vmul.f32 %v3422_v62, %v2604_v23  ;;  %v1789_v11 = vadd.f32 %v4935_v8, %v4594_v22  ;;  %v2876_v49 = vmul.f32 -1.442695, %v2344_v24 }
 0x2cb   : > { %v3426_v27 = vpop.eup %3425  ;;  %3451 = vpow2.f32 %v2888_v15  ;;  %v2606_v29 = vsub.f32 1.0, %v3424_v30  ;;  %v2638_v59 = vmul.f32 %v3424_v30, %v4938_v35  ;;  %v1909_v28 = vadd.f32 %v4939_v26, %v4604_v37  ;;  %v4940_v30 = vld [vmem:[#allocation9_spill] sm:$0xff] }
 0x2cc   : > { %v3428_v25 = vpop.eup %3427  ;;  %v2652_v55 = vadd.f32 %v2636_v10, %v2620_v4  ;;  %3453 = vpow2.f32 %v2875_v53  ;;  %v2561_v36 = vmul.f32 %v3426_v27, %v4781_v19  ;;  %v2455_v57 = vadd.f32 %v2176_v33, %v1789_v11 }
 0x2cd   : > { %v3430_v5 = vpop.eup %3429  ;;  %v2619_v20 = vmul.f32 %v3428_v25, %v2603_v0  ;;  %3455 = vpow2.f32 %v2889_v3  ;;  %v2296_v19 = vadd.f32 %v4751_v58, %v4652_v56  ;;  %v2605_v58 = vsub.f32 1.0, %v4806_v13  ;;  %v2310_v0 = vpop.f32.mrf.mxu1 }
 0x2ce   : > { %v3432_v42 = vpop.eup %3431  ;;  %2668 = vst [vmem:[%s4801_s21 + $0x18] sm:$0xff] %v2652_v55  ;;  %3457 = vtanh.f32 %v2576_v51  ;;  %v2577_v48 = vadd.f32 %v2561_v36, %v1904_v46  ;;  %v2515_v18 = vadd.f32 1.0, %v3430_v5  ;;  %v2891_v10 = vmul.f32 -1.442695, %v2455_v57 }
 0x2cf   : > { %v4834_v22 = vpop.eup %3433  ;;  %3459 = vrcp.f32 %v2514_v40  ;;  %v2651_v14 = vadd.f32 %v2635_v43, %v2619_v20  ;;  %v2404_v7 = vadd.f32 1.0, %v3432_v42  ;;  %v2301_v54 = vadd.f32 %v2300_v2, %v4652_v56  ;;  %v3511_v42 = vld [vmem:[%s4424_s14 + $0x30] sm:$0xff] }
 0x2d0   : > { %v3436_v47 = vpop.eup %3435  ;;  %3461 = vtanh.f32 %v2575_v17  ;;  %v2637_v61 = vmul.f32 %v3509_v50, %v4806_v13  ;;  %v1914_v4 = vadd.f32 %v4940_v30, %v4604_v37  ;;  %v2892_v46 = vmul.f32 -1.442695, %v4822_v60 }
 0x2d1   : > { %v3438_v41 = vpop.eup %3437  ;;  %2667 = vst [vmem:[%s4801_s21 + $0x10] sm:$0xff] %v2651_v14  ;;  %3463 = vrcp.f32 %v2404_v7  ;;  %v2405_v34 = vadd.f32 1.0, %v3436_v47  ;;  %v2306_v11 = vadd.f32 %v4831_v6, %v4652_v56  ;;  %v2607_v39 = vsub.f32 1.0, %v4834_v22  ;;  %v4941_v7 = vld [vmem:[#allocation10_spill] sm:$0xff] }
 0x2d2   : > { %v3440_v52 = vpop.eup %3439  ;;  %v2622_v21 = vmul.f32 %v3438_v41, %v2606_v29  ;;  %3465 = vpow2.f32 %v2890_v45  ;;  %v2311_v60 = vadd.f32 %v2310_v0, %v4652_v56  ;;  %v2639_v45 = vmul.f32 %v3511_v42, %v4834_v22  ;;  %v3192_v29 = vpop.f32.mrf.mxu1  ;;  %v3514_v0 = vld [vmem:[%s4424_s14 + $0x50] sm:$0xff] }
 0x2d3   : > { %v3442_v12 = vpop.eup %3441  ;;  %3467 = vrcp.f32 %v2405_v34  ;;  %v2608_v31 = vsub.f32 1.0, %v3440_v52  ;;  %v2640_v24 = vmul.f32 %v3510_v44, %v3440_v52 }
 0x2d4   : > { %v3444_v23 = vpop.eup %3443  ;;  %v2654_v16 = vadd.f32 %v2638_v59, %v2622_v21  ;;  %3469 = vpow2.f32 %v2876_v49  ;;  %v2562_v17 = vmul.f32 %v3442_v12, %v2296_v19  ;;  %v2316_v59 = vadd.f32 %v3189_v63, %v4652_v56 }
 0x2d5   : > { %v4844_v15 = vpop.eup %3445  ;;  %3471 = vrcp.f32 %v2515_v18  ;;  %v2621_v38 = vmul.f32 %v3444_v23, %v2605_v58  ;;  %v4942_v18 = vld [vmem:[#allocation11_spill] sm:$0xff] }
 0x2d6   : > { %v3448_v32 = vpop.eup %3447  ;;  %2670 = vst [vmem:[%s4801_s21 + $0x28] sm:$0xff] %v2654_v16  ;;  %3473 = vpow2.f32 %v2891_v10  ;;  %v2578_v53 = vadd.f32 %v2562_v17, %v1909_v28  ;;  %v1924_v34 = vadd.f32 %v4942_v18, %v4604_v37  ;;  %v2609_v12 = vsub.f32 1.0, %v4844_v15  ;;  %v2320_v28 = vpop.f32.mrf.mxu1  ;;  %v3512_v17 = vld [vmem:[%s4424_s14 + $0x40] sm:$0xff] }
 0x2d7   : > { %v3450_v62 = vpop.eup %3449  ;;  %v2653_v3 = vadd.f32 %v2637_v61, %v2621_v38  ;;  %v2406_v51 = vadd.f32 1.0, %v3448_v32  ;;  %3475 = vtanh.f32 %v2577_v48  ;;  %v1919_v48 = vadd.f32 %v4941_v7, %v4604_v37  ;;  %v3513_v38 = vld [vmem:[%s4424_s14 + $0x48] sm:$0xff] }
 0x2d8   : > { %v3452_v33 = vpop.eup %3451  ;;  %3477 = vtanh.f32 %v2578_v53  ;;  %v2563_v1 = vmul.f32 %v3450_v62, %v2301_v54  ;;  %v2641_v54 = vmul.f32 %v3512_v17, %v4844_v15  ;;  %v2321_v62 = vadd.f32 %v2320_v28, %v4652_v56  ;;  %v3519_v17 = vld [vmem:[%s4424_s14 + $0x78] sm:$0xff] }
 0x2d9   : > { %v3454_v13 = vpop.eup %3453  ;;  %2669 = vst [vmem:[%s4801_s21 + $0x20] sm:$0xff] %v2653_v3  ;;  %3479 = vrcp.f32 %v2406_v51  ;;  %v2516_v8 = vadd.f32 1.0, %v3452_v33  ;;  %v4943_v3 = vld [vmem:[#allocation12_spill] sm:$0xff] }
 0x2da   : > { %v3456_v9 = vpop.eup %3455  ;;  %v2407_v27 = vadd.f32 1.0, %v3454_v13  ;;  %v2579_v40 = vadd.f32 %v2563_v1, %v1914_v4  ;;  %v1929_v51 = vadd.f32 %v4943_v3, %v4604_v37 }
 0x2db   : > { %v3458_v25 = vpop.eup %3457  ;;  %v2517_v20 = vadd.f32 1.0, %v3456_v9 }
 0x2dc   : > { %v3460_v55 = vpop.eup %3459  ;;  %3481 = vrcp.f32 %v2407_v27  ;;  %v2624_v5 = vmul.f32 %v3458_v25, %v2608_v31  ;;  %v4944_v27 = vld [vmem:[#allocation14_spill] sm:$0xff] }
 0x2dd   : > { %v3462_v43 = vpop.eup %3461  ;;  %3483 = vtanh.f32 %v2579_v40  ;;  %v2610_v23 = vsub.f32 1.0, %v3460_v55  ;;  %v2642_v32 = vmul.f32 %v3513_v38, %v3460_v55  ;;  %v1934_v31 = vadd.f32 %v4944_v27, %v4604_v37 }
 0x2de   : > { %v3464_v36 = vpop.eup %3463  ;;  %v2656_v57 = vadd.f32 %v2640_v24, %v2624_v5  ;;  %v2623_v14 = vmul.f32 %v3462_v43, %v2607_v39  ;;  %3485 = vpow2.f32 %v2892_v46  ;;  %v2326_v43 = vadd.f32 %v3192_v29, %v4652_v56 }
 0x2df   : > { %v3466_v6 = vpop.eup %3465  ;;  %3487 = vrcp.f32 %v2516_v8  ;;  %v2564_v47 = vmul.f32 %v3464_v36, %v2306_v11 }
 0x2e0   : > { %v3468_v49 = vpop.eup %3467  ;;  %2672 = vst [vmem:[%s4801_s21 + $0x38] sm:$0xff] %v2656_v57  ;;  %v2655_v19 = vadd.f32 %v2639_v45, %v2623_v14  ;;  %3489 = vrcp.f32 %v2517_v20  ;;  %v2518_v10 = vadd.f32 1.0, %v3466_v6  ;;  %v3516_v6 = vld [vmem:[%s4424_s14 + $0x60] sm:$0xff] }
 0x2e1   : > { %v3470_v41 = vpop.eup %3469  ;;  %v2580_v22 = vadd.f32 %v2564_v47, %v1919_v48  ;;  %v2565_v2 = vmul.f32 %v3468_v49, %v2311_v60  ;;  %v3515_v60 = vld [vmem:[%s4424_s14 + $0x58] sm:$0xff] }
 0x2e2   : > { %v3472_v52 = vpop.eup %3471  ;;  %2671 = vst [vmem:[%s4801_s21 + $0x30] sm:$0xff] %v2655_v19  ;;  %v2408_v35 = vadd.f32 1.0, %v3470_v41  ;;  %v4945_v19 = vld [vmem:[#allocation17_spill] sm:$0xff] }
 0x2e3   : > { %v3474_v21 = vpop.eup %3473  ;;  %3491 = vtanh.f32 %v2580_v22  ;;  %v2581_v26 = vadd.f32 %v2565_v2, %v1924_v34  ;;  %v2611_v15 = vsub.f32 1.0, %v3472_v52  ;;  %v2643_v25 = vmul.f32 %v3514_v0, %v3472_v52  ;;  %v3517_v22 = vld [vmem:[%s4424_s14 + $0x68] sm:$0xff] }
 0x2e4   : > { %v3476_v58 = vpop.eup %3475  ;;  %3493 = vrcp.f32 %v2408_v35  ;;  %v2519_v53 = vadd.f32 1.0, %v3474_v21 }
 0x2e5   : > { %v3478_v16 = vpop.eup %3477  ;;  %v2625_v50 = vmul.f32 %v3476_v58, %v2609_v12  ;;  %3495 = vtanh.f32 %v2581_v26 }
 0x2e6   : > { %v3480_v61 = vpop.eup %3479  ;;  %v2626_v63 = vmul.f32 %v3478_v16, %v2610_v23  ;;  %3497 = vrcp.f32 %v2518_v10  ;;  %v3518_v10 = vld [vmem:[%s4424_s14 + $0x70] sm:$0xff] }
 0x2e7   : > { %v2657_v33 = vadd.f32 %v2641_v54, %v2625_v50  ;;  %v2566_v30 = vmul.f32 %v3480_v61, %v2316_v59  ;;  %3499 = vrcp.f32 %v2519_v53 }
 0x2e8   : > { %v2658_v4 = vadd.f32 %v2642_v32, %v2626_v63 }
 0x2e9   : > { %v3482_v1 = vpop.eup %3481  ;;  %2673 = vst [vmem:[%s4801_s21 + $0x40] sm:$0xff] %v2657_v33  ;;  %v2582_v13 = vadd.f32 %v2566_v30, %v1929_v51 }
 0x2ea   : > { %v3484_v9 = vpop.eup %3483  ;;  %2674 = vst [vmem:[%s4801_s21 + $0x48] sm:$0xff] %v2658_v4  ;;  %v2567_v46 = vmul.f32 %v3482_v1, %v2321_v62 }
 0x2eb   : > { %v3486_v40 = vpop.eup %3485  ;;  %v2627_v8 = vmul.f32 %v3484_v9, %v2611_v15  ;;  %3501 = vtanh.f32 %v2582_v13 }
 0x2ec   : > { %v3488_v11 = vpop.eup %3487  ;;  %v2583_v55 = vadd.f32 %v2567_v46, %v1934_v31  ;;  %v2520_v5 = vadd.f32 1.0, %v3486_v40 }
 0x2ed   : > { %v2659_v44 = vadd.f32 %v2643_v25, %v2627_v8  ;;  %v3490_v24 = vpop.eup %3489  ;;  %v2612_v39 = vsub.f32 1.0, %v3488_v11  ;;  %v2644_v36 = vmul.f32 %v3515_v60, %v3488_v11 }
 0x2ee   : > { %3503 = vtanh.f32 %v2583_v55  ;;  %v2613_v45 = vsub.f32 1.0, %v3490_v24  ;;  %v2645_v7 = vmul.f32 %v3516_v6, %v3490_v24 }
 0x2ef   : > { %2675 = vst [vmem:[%s4801_s21 + $0x50] sm:$0xff] %v2659_v44  ;;  %3505 = vrcp.f32 %v2520_v5 }
 0x2f0   : > { %v3492_v37 = vpop.eup %3491 }
 0x2f1   : > { %v3494_v20 = vpop.eup %3493  ;;  %v2628_v42 = vmul.f32 %v3492_v37, %v2612_v39 }
 0x2f2   : > { %v3496_v57 = vpop.eup %3495  ;;  %v2568_v14 = vmul.f32 %v3494_v20, %v2326_v43 }
 0x2f3   : > { %v2660_v48 = vadd.f32 %v2644_v36, %v2628_v42  ;;  %v2629_v47 = vmul.f32 %v3496_v57, %v2613_v45  ;;  %v3498_v49 = vpop.eup %3497 }
 0x2f4   : > { %v2584_v41 = vadd.f32 %v2568_v14, %v4945_v19  ;;  %v3500_v29 = vpop.eup %3499  ;;  %v2614_v18 = vsub.f32 1.0, %v3498_v49  ;;  %v2646_v2 = vmul.f32 %v3517_v22, %v3498_v49 }
 0x2f5   : > { %2676 = vst [vmem:[%s4801_s21 + $0x58] sm:$0xff] %v2660_v48  ;;  %v2661_v56 = vadd.f32 %v2645_v7, %v2629_v47  ;;  %v2615_v35 = vsub.f32 1.0, %v3500_v29  ;;  %v2647_v12 = vmul.f32 %v3518_v10, %v3500_v29 }
 0x2f6   : > { %3507 = vtanh.f32 %v2584_v41 }
 0x2f7   : > { %2677 = vst [vmem:[%s4801_s21 + $0x60] sm:$0xff] %v2661_v56 }
 0x2f8   : > { %v3502_v34 = vpop.eup %3501 }
 0x2f9   : > { %v2630_v52 = vmul.f32 %v3502_v34, %v2614_v18 }
 0x2fb   : > { %v3504_v59 = vpop.eup %3503  ;;  %v2662_v21 = vadd.f32 %v2646_v2, %v2630_v52 }
 0x2fc   : > { %v2631_v26 = vmul.f32 %v3504_v59, %v2615_v35  ;;  %v3506_v58 = vpop.eup %3505 }
 0x2fd   : > { %2678 = vst [vmem:[%s4801_s21 + $0x68] sm:$0xff] %v2662_v21  ;;  %v2616_v23 = vsub.f32 1.0, %v3506_v58  ;;  %v2648_v54 = vmul.f32 %v3519_v17, %v3506_v58 }
 0x2fe   : > { %v2663_v28 = vadd.f32 %v2647_v12, %v2631_v26 }
 0x300   : > { %2679 = vst [vmem:[%s4801_s21 + $0x70] sm:$0xff] %v2663_v28 }
 0x303   : > { %v3508_v16 = vpop.eup %3507 }
 0x304   : > { %v2632_v50 = vmul.f32 %v3508_v16, %v2616_v23 }
 0x306   : > { %v2664_v61 = vadd.f32 %v2648_v54, %v2632_v50 }
 0x308   : > { %2680 = vst [vmem:[%s4801_s21 + $0x78] sm:$0xff] %v2664_v61 }
 0x309 PF: > { %s18_s29 = sadd.s32 1, %s3542_s29   ;;  %s4946_s27 = smov %s3538_s28 }
 0x30a   : > { %p15_p5 = scmp.ge.s32.totalorder %s18_s29, 4   ;;  %s4947_s28 = smov %s4949_s30 }
 0x30c   :  { %17 = sbr.rel (!%p15_p5) target bundleno = 2 (0x2), region = 99 }

</bundles_post_ra>
